<compile_context>
chip_gen: v7x
topology: tpu7x:2x2x1
jax: 0.10.0
libtpu: 0.0.40
codegen_flags: <defaults>
</compile_context>

<pallas_src>
import jax
import jax.numpy as jnp
from jax.experimental import pallas as pl
from jax.experimental.pallas import tpu as pltpu

_LN_EPS = 1e-5  # torch.nn.LayerNorm default


def _round_up(n, m):
    return ((n + m - 1) // m) * m


def _layernorm(h, gamma, beta):
    mu = jnp.mean(h, axis=-1, keepdims=True)
    var = jnp.mean(jnp.square(h - mu), axis=-1, keepdims=True)
    return (h - mu) * jax.lax.rsqrt(var + _LN_EPS) * gamma + beta


# ---------------------------------------------------------------------------
# Fused SeqLinear block body  (Linear -> ReLU -> LayerNorm -> Linear)
# Shared by the single-input and paired (trans_1/trans_2) kernels.
# ---------------------------------------------------------------------------
def seqlinear2_kernel(x_ref, w1t_ref, b1_ref, g_ref, beta_ref, w2t_ref, b2_ref, o_ref):
    x = x_ref[...]                                                     # (TM, Fin)
    h = jnp.dot(x, w1t_ref[...], preferred_element_type=jnp.float32) + b1_ref[...]
    h = jnp.maximum(h, 0.0)
    h = _layernorm(h, g_ref[...], beta_ref[...])
    o_ref[...] = (jnp.dot(h, w2t_ref[...], preferred_element_type=jnp.float32)
                  + b2_ref[...]).astype(o_ref.dtype)


def seqlinear2(x, w1, b1, gamma, beta, w2, b2, *, row_tile=256):
    """x: (M, Fin); w1: (H, Fin); w2: (Fout, H). Returns (M, Fout)."""
    M, Fin = x.shape
    H = w1.shape[0]
    Fout = w2.shape[0]

    Mp = _round_up(M, 8)
    tm = min(Mp, row_tile)
    Mp = _round_up(Mp, tm)
    xp = x if Mp == M else jnp.pad(x, ((0, Mp - M), (0, 0)))

    out = pl.pallas_call(
        seqlinear2_kernel,
        out_shape=jax.ShapeDtypeStruct((Mp, Fout), jnp.float32),
        grid=(Mp // tm,),
        in_specs=[
            pl.BlockSpec((tm, Fin), lambda i: (i, 0)),    # row tile of x
            pl.BlockSpec((Fin, H), lambda i: (0, 0)),     # W1^T (full)
            pl.BlockSpec((1, H), lambda i: (0, 0)),       # b1
            pl.BlockSpec((1, H), lambda i: (0, 0)),       # LN gamma
            pl.BlockSpec((1, H), lambda i: (0, 0)),       # LN beta
            pl.BlockSpec((H, Fout), lambda i: (0, 0)),    # W2^T (full)
            pl.BlockSpec((1, Fout), lambda i: (0, 0)),    # b2
        ],
        out_specs=pl.BlockSpec((tm, Fout), lambda i: (i, 0)),
        compiler_params=pltpu.CompilerParams(dimension_semantics=("parallel",)),
    )(xp, w1.T, b1.reshape(1, H), gamma.reshape(1, H), beta.reshape(1, H),
      w2.T, b2.reshape(1, Fout))
    return out[:M]


def seqlinear2_pair(x_list, p_list, *, row_tile=256):
    """Run two SeqLinear blocks with identical shapes (trans_1 / trans_2) in one pallas_call.

    x_list: [x_a (Ma, Fin), x_d (Md, Fin)]; p_list: [params_a, params_b] each
    (w1 (H,Fin), b1, gamma, beta, w2 (Fout,H), b2).  Returns stacked padded output
    (2, Mp, Fout) plus Mp so callers can index into it.
    """
    Fin = x_list[0].shape[1]
    H = p_list[0][0].shape[0]
    Fout = p_list[0][4].shape[0]

    Mp = _round_up(max(x.shape[0] for x in x_list), 8)
    tm = min(Mp, row_tile)
    Mp = _round_up(Mp, tm)

    xs = jnp.stack([jnp.pad(x, ((0, Mp - x.shape[0]), (0, 0))) for x in x_list])   # (2, Mp, Fin)
    w1t = jnp.stack([p[0].T for p in p_list])                                      # (2, Fin, H)
    b1 = jnp.stack([p[1].reshape(1, H) for p in p_list])                           # (2, 1, H)
    gm = jnp.stack([p[2].reshape(1, H) for p in p_list])
    bt = jnp.stack([p[3].reshape(1, H) for p in p_list])
    w2t = jnp.stack([p[4].T for p in p_list])                                      # (2, H, Fout)
    b2 = jnp.stack([p[5].reshape(1, Fout) for p in p_list])

    out = pl.pallas_call(
        seqlinear2_kernel,
        out_shape=jax.ShapeDtypeStruct((2, Mp, Fout), jnp.float32),
        grid=(2, Mp // tm),
        in_specs=[
            pl.BlockSpec((None, tm, Fin), lambda g, i: (g, i, 0)),    # row tile of group g
            pl.BlockSpec((None, Fin, H), lambda g, i: (g, 0, 0)),     # W1^T of group g
            pl.BlockSpec((None, 1, H), lambda g, i: (g, 0, 0)),       # b1
            pl.BlockSpec((None, 1, H), lambda g, i: (g, 0, 0)),       # LN gamma
            pl.BlockSpec((None, 1, H), lambda g, i: (g, 0, 0)),       # LN beta
            pl.BlockSpec((None, H, Fout), lambda g, i: (g, 0, 0)),    # W2^T
            pl.BlockSpec((None, 1, Fout), lambda g, i: (g, 0, 0)),    # b2
        ],
        out_specs=pl.BlockSpec((None, tm, Fout), lambda g, i: (g, i, 0)),
        compiler_params=pltpu.CompilerParams(
            dimension_semantics=("parallel", "parallel")),
    )(xs, w1t, b1, gm, bt, w2t, b2)
    return out, Mp


# ---------------------------------------------------------------------------
# Fused 2-layer GCN  (GCNConv -> ReLU -> LayerNorm -> GCNConv)
# a_norm is the dense, symmetrically normalized adjacency D^-1/2 A D^-1/2.
# ---------------------------------------------------------------------------
def gcn2_kernel(an_ref, x_ref, w0t_ref, b0_ref, g_ref, beta_ref, w1t_ref, b1_ref, o_ref):
    an = an_ref[...]                                                   # (Np, Np)
    x = x_ref[...]                                                     # (Np, F0)
    h = jnp.dot(x, w0t_ref[...], preferred_element_type=jnp.float32)   # (Np, H)
    h = jnp.dot(an, h, preferred_element_type=jnp.float32) + b0_ref[...]
    h = jnp.maximum(h, 0.0)
    h = _layernorm(h, g_ref[...], beta_ref[...])
    h = jnp.dot(h, w1t_ref[...], preferred_element_type=jnp.float32)   # (Np, F1)
    o_ref[...] = (jnp.dot(an, h, preferred_element_type=jnp.float32)
                  + b1_ref[...]).astype(o_ref.dtype)


def gcn2(a_norm, x, wg0, bg0, gamma, beta, wg1, bg1):
    """a_norm: (N, N); x: (N, F0); wg0: (H, F0); wg1: (F1, H). Returns (N, F1)."""
    N, F0 = x.shape
    H = wg0.shape[0]
    F1 = wg1.shape[0]

    Np = _round_up(N, 8)
    if Np != N:
        a_p = jnp.pad(a_norm, ((0, Np - N), (0, Np - N)))
        x_p = jnp.pad(x, ((0, Np - N), (0, 0)))
    else:
        a_p, x_p = a_norm, x

    out = pl.pallas_call(
        gcn2_kernel,
        out_shape=jax.ShapeDtypeStruct((Np, F1), jnp.float32),
        grid=(1,),
        in_specs=[
            pl.BlockSpec((Np, Np), lambda i: (0, 0)),     # normalized adjacency
            pl.BlockSpec((Np, F0), lambda i: (0, 0)),     # node features
            pl.BlockSpec((F0, H), lambda i: (0, 0)),      # Wg0^T
            pl.BlockSpec((1, H), lambda i: (0, 0)),       # bg0
            pl.BlockSpec((1, H), lambda i: (0, 0)),       # LN gamma
            pl.BlockSpec((1, H), lambda i: (0, 0)),       # LN beta
            pl.BlockSpec((H, F1), lambda i: (0, 0)),      # Wg1^T
            pl.BlockSpec((1, F1), lambda i: (0, 0)),      # bg1
        ],
        out_specs=pl.BlockSpec((Np, F1), lambda i: (0, 0)),
        compiler_params=pltpu.CompilerParams(dimension_semantics=("arbitrary",)),
    )(a_p, x_p, wg0.T, bg0.reshape(1, H), gamma.reshape(1, H), beta.reshape(1, H),
      wg1.T, bg1.reshape(1, F1))
    return out[:N]


# ---------------------------------------------------------------------------
# Glue (data-dependent indexing — plain JAX, not kernels)
# ---------------------------------------------------------------------------
def concat_perm(n1, n2, row_offset):
    """Permutation that interleaves per-graph albef / dot rows of the stacked (2, Mp, F) output."""
    idx, c1, c2 = [], 0, 0
    for a, d in zip(n1, n2):
        idx.extend(range(c1, c1 + a))                        # group-0 rows (albef)
        idx.extend(row_offset + r for r in range(c2, c2 + d))  # group-1 rows (dot)
        c1 += a
        c2 += d
    return jnp.array(idx, jnp.int32)


def cls_indices(n1, n2):
    i1, i2, off = [], [], 0
    for a, d in zip(n1, n2):
        i1.append(off)
        i2.append(off + a)
        off += a + d
    return jnp.array(i1, jnp.int32), jnp.array(i2, jnp.int32)


def gcn_norm_dense(edge_index, edge_attr, num_nodes):
    src, dst = edge_index[0], edge_index[1]
    a = jnp.zeros((num_nodes, num_nodes), jnp.float32).at[dst, src].add(edge_attr)
    deg = jnp.sum(a, axis=1)
    dinv = jnp.where(deg > 0.0, jax.lax.rsqrt(jnp.where(deg > 0.0, deg, 1.0)), 0.0)
    return a * dinv[:, None] * dinv[None, :]


# ---------------------------------------------------------------------------
# EnLiFu forward (Pallas)
# ---------------------------------------------------------------------------
def enlifu_forward_pallas(params, x_albef, x_dot, n_albef, n_dot,
                          edge_index, edge_attr, batch_index,
                          x_cls_albef, x_cls_dot):
    del batch_index  # only used by torch_geometric-style LayerNorm; per-node LN here
    p_t1, p_t2, p_gcn, p_lin = params

    # trans_1 + trans_2 in one fused pallas_call (identical shapes, two weight sets).
    t_pair, Mp = seqlinear2_pair([x_albef, x_dot], [p_t1, p_t2])
    flat = t_pair.reshape(2 * Mp, t_pair.shape[-1])
    perm = concat_perm(n_albef, n_dot, Mp)
    xc = jnp.take(flat, perm, axis=0)                     # concat_node as one gather

    a_norm = gcn_norm_dense(edge_index, edge_attr, xc.shape[0])
    xg = gcn2(a_norm, xc, *p_gcn)                         # two GCNConv layers, fused

    i1, i2 = cls_indices(n_albef, n_dot)
    g_cls_albef, g_cls_dot = xg[i1], xg[i2]               # unconcat_node
    x_enc = jnp.concatenate([g_cls_albef, x_cls_albef, x_cls_dot, g_cls_dot], axis=1)
    return seqlinear2(x_enc, *p_lin)                      # final SeqLinear encoder


# ---------------------------------------------------------------------------
# Pure-JAX reference (mirrors the PyTorch module in eval mode)
# ---------------------------------------------------------------------------
def enlifu_forward_reference(params, x_albef, x_dot, n_albef, n_dot,
                             edge_index, edge_attr, batch_index,
                             x_cls_albef, x_cls_dot):
    del batch_index

    def seql(x, p):
        w1, b1, g, bt, w2, b2 = p
        h = jnp.maximum(x @ w1.T + b1, 0.0)
        mu = jnp.mean(h, axis=-1, keepdims=True)
        var = jnp.mean((h - mu) ** 2, axis=-1, keepdims=True)
        h = (h - mu) / jnp.sqrt(var + _LN_EPS) * g + bt
        return h @ w2.T + b2

    def concat_node(x1, x2, n1, n2):
        parts, c1, c2 = [], 0, 0
        for a, d in zip(n1, n2):
            parts.append(x1[c1:c1 + a])
            parts.append(x2[c2:c2 + d])
            c1 += a
            c2 += d
        return jnp.concatenate(parts, axis=0)

    p_t1, p_t2, p_gcn, p_lin = params
    t1, t2 = seql(x_albef, p_t1), seql(x_dot, p_t2)
    xc = concat_node(t1, t2, n_albef, n_dot)
    a_norm = gcn_norm_dense(edge_index, edge_attr, xc.shape[0])
    wg0, bg0, gg, gb, wg1, bg1 = p_gcn
    h = a_norm @ (xc @ wg0.T) + bg0
    h = jnp.maximum(h, 0.0)
    mu = jnp.mean(h, axis=-1, keepdims=True)
    var = jnp.mean((h - mu) ** 2, axis=-1, keepdims=True)
    h = (h - mu) / jnp.sqrt(var + _LN_EPS) * gg + gb
    xg = a_norm @ (h @ wg1.T) + bg1
    i1, i2 = cls_indices(n_albef, n_dot)
    x_enc = jnp.concatenate([xg[i1], x_cls_albef, x_cls_dot, xg[i2]], axis=1)
    return seql(x_enc, p_lin)


if __name__ == "__main__":
    # Small configuration consistent with the module (input feature dim 768 is fixed by EnLiFu).
    FT_IN = 768
    ft_trans = [256, 256]
    ft_gcn = [256, 128]
    ft_com = [128, 128]

    B = 2
    n_albef = (3, 4)
    n_dot = (2, 3)
    Na, Nd = sum(n_albef), sum(n_dot)

    key = jax.random.PRNGKey(0)
    keys = iter(jax.random.split(key, 40))

    def lin_params(fin, fout):
        return (jax.random.normal(next(keys), (fout, fin), jnp.float32) * 0.05,
                jax.random.normal(next(keys), (fout,), jnp.float32) * 0.05)

    def ln_params(f):
        return (1.0 + 0.1 * jax.random.normal(next(keys), (f,), jnp.float32),
                0.1 * jax.random.normal(next(keys), (f,), jnp.float32))

    def seqlinear2_params(fin, h, fout):
        w1, b1 = lin_params(fin, h)
        g, bt = ln_params(h)
        w2, b2 = lin_params(h, fout)
        return (w1, b1, g, bt, w2, b2)

    p_t1 = seqlinear2_params(FT_IN, ft_trans[0], ft_trans[1])
    p_t2 = seqlinear2_params(FT_IN, ft_trans[0], ft_trans[1])
    wg0, bg0 = lin_params(ft_trans[-1], ft_gcn[0])
    gg, gb = ln_params(ft_gcn[0])
    wg1, bg1 = lin_params(ft_gcn[0], ft_gcn[1])
    p_gcn = (wg0, bg0, gg, gb, wg1, bg1)
    p_lin = seqlinear2_params(2 * ft_gcn[-1] + 2 * FT_IN, ft_com[0], ft_com[1])
    params = (p_t1, p_t2, p_gcn, p_lin)

    # Inputs.
    x_albef = jax.random.normal(next(keys), (Na, FT_IN), jnp.float32)
    x_dot = jax.random.normal(next(keys), (Nd, FT_IN), jnp.float32)
    x_cls_albef = jax.random.normal(next(keys), (B, FT_IN), jnp.float32)
    x_cls_dot = jax.random.normal(next(keys), (B, FT_IN), jnp.float32)

    # Fully-connected (no self loops) edges within each graph, positive edge weights.
    src, dst, batch_list, off = [], [], [], 0
    for g_i in range(B):
        n = n_albef[g_i] + n_dot[g_i]
        batch_list += [g_i] * n
        for i in range(n):
            for j in range(n):
                if i != j:
                    src.append(off + i)
                    dst.append(off + j)
        off += n
    edge_index = jnp.array([src, dst], dtype=jnp.int32)
    edge_attr = jax.random.uniform(next(keys), (edge_index.shape[1],), jnp.float32, 0.5, 1.5)
    batch_index = jnp.array(batch_list, dtype=jnp.int32)

    out = enlifu_forward_pallas(params, x_albef, x_dot, n_albef, n_dot,
                                edge_index, edge_attr, batch_index,
                                x_cls_albef, x_cls_dot)
    out = jax.block_until_ready(out)

    ref = enlifu_forward_reference(params, x_albef, x_dot, n_albef, n_dot,
                                   edge_index, edge_attr, batch_index,
                                   x_cls_albef, x_cls_dot)
    ref = jax.block_until_ready(ref)

    assert out.shape == (B, ft_com[-1]), out.shape
    max_err = float(jnp.max(jnp.abs(out - ref)))
    assert jnp.allclose(out, ref, atol=3e-2, rtol=3e-2), max_err
    print("KERNEL_OK")
</pallas_src>

<mosaic_0001>
module attributes {stable_mosaic.version = 11 : i64} {
  func.func @seqlinear2_kernel(%arg0: i32, %arg1: i32, %arg2: memref<1x8x768xf32, #tpu.memory_space<vmem>>, %arg3: memref<1x768x256xf32, #tpu.memory_space<vmem>>, %arg4: memref<1x1x256xf32, #tpu.memory_space<vmem>>, %arg5: memref<1x1x256xf32, #tpu.memory_space<vmem>>, %arg6: memref<1x1x256xf32, #tpu.memory_space<vmem>>, %arg7: memref<1x256x256xf32, #tpu.memory_space<vmem>>, %arg8: memref<1x1x256xf32, #tpu.memory_space<vmem>>, %arg9: memref<1x8x256xf32, #tpu.memory_space<vmem>>) attributes {dimension_semantics = [#tpu.dimension_semantics<parallel>, #tpu.dimension_semantics<parallel>], iteration_bounds = array<i64: 2, 1>, scalar_prefetch = 0 : i64, scratch_operands = 0 : i64, tpu.core_type = #tpu.core_type<tc>, window_params = [{transform_indices = @transform_0, window_bounds = array<i64: 1, 8, 768>}, {transform_indices = @transform_1, window_bounds = array<i64: 1, 768, 256>}, {transform_indices = @transform_2, window_bounds = array<i64: 1, 1, 256>}, {transform_indices = @transform_3, window_bounds = array<i64: 1, 1, 256>}, {transform_indices = @transform_4, window_bounds = array<i64: 1, 1, 256>}, {transform_indices = @transform_5, window_bounds = array<i64: 1, 256, 256>}, {transform_indices = @transform_6, window_bounds = array<i64: 1, 1, 256>}, {transform_indices = @transform_7, window_bounds = array<i64: 1, 8, 256>}]} {
    %c0 = arith.constant 0 : index
    %c0_0 = arith.constant 0 : index
    %c0_1 = arith.constant 0 : index
    %0 = vector.load %arg2[%c0, %c0_0, %c0_1] : memref<1x8x768xf32, #tpu.memory_space<vmem>>, vector<1x8x768xf32>
    %1 = vector.shape_cast %0 : vector<1x8x768xf32> to vector<8x768xf32>
    %c0_2 = arith.constant 0 : index
    %c0_3 = arith.constant 0 : index
    %c0_4 = arith.constant 0 : index
    %2 = vector.load %arg3[%c0_2, %c0_3, %c0_4] : memref<1x768x256xf32, #tpu.memory_space<vmem>>, vector<1x768x256xf32>
    %3 = vector.shape_cast %2 : vector<1x768x256xf32> to vector<768x256xf32>
    %cst = arith.constant dense<0.000000e+00> : vector<8x256xf32>
    %4 = tpu.matmul %1, %3, %cst {dimension_numbers = #tpu.dot_dimension_numbers<[1], [0], [0], [1], [0, 0, 1, 1], [], []>} : vector<8x768xf32>, vector<768x256xf32>, vector<8x256xf32> -> vector<8x256xf32>
    %c0_5 = arith.constant 0 : index
    %c0_6 = arith.constant 0 : index
    %c0_7 = arith.constant 0 : index
    %5 = vector.load %arg4[%c0_5, %c0_6, %c0_7] : memref<1x1x256xf32, #tpu.memory_space<vmem>>, vector<1x1x256xf32>
    %6 = vector.shape_cast %5 : vector<1x1x256xf32> to vector<1x256xf32>
    %7 = vector.broadcast %6 : vector<1x256xf32> to vector<8x256xf32>
    %8 = arith.addf %4, %7 : vector<8x256xf32>
    %cst_8 = arith.constant 0.000000e+00 : f32
    %9 = vector.broadcast %cst_8 : f32 to vector<8x256xf32>
    %10 = arith.maximumf %8, %9 : vector<8x256xf32>
    %c0_9 = arith.constant 0 : index
    %c0_10 = arith.constant 0 : index
    %c0_11 = arith.constant 0 : index
    %11 = vector.load %arg5[%c0_9, %c0_10, %c0_11] : memref<1x1x256xf32, #tpu.memory_space<vmem>>, vector<1x1x256xf32>
    %12 = vector.shape_cast %11 : vector<1x1x256xf32> to vector<1x256xf32>
    %c0_12 = arith.constant 0 : index
    %c0_13 = arith.constant 0 : index
    %c0_14 = arith.constant 0 : index
    %13 = vector.load %arg6[%c0_12, %c0_13, %c0_14] : memref<1x1x256xf32, #tpu.memory_space<vmem>>, vector<1x1x256xf32>
    %14 = vector.shape_cast %13 : vector<1x1x256xf32> to vector<1x256xf32>
    %cst_15 = arith.constant dense<0.000000e+00> : vector<8xf32>
    %15 = vector.multi_reduction <add>, %10, %cst_15 [1] : vector<8x256xf32> to vector<8xf32>
    %16 = vector.shape_cast %15 : vector<8xf32> to vector<8x1xf32>
    %cst_16 = arith.constant 2.560000e+02 : f32
    %17 = vector.broadcast %cst_16 : f32 to vector<8x1xf32>
    %18 = arith.divf %16, %17 : vector<8x1xf32>
    %19 = vector.broadcast %18 : vector<8x1xf32> to vector<8x256xf32>
    %20 = arith.subf %10, %19 : vector<8x256xf32>
    %21 = arith.mulf %20, %20 : vector<8x256xf32>
    %cst_17 = arith.constant dense<0.000000e+00> : vector<8xf32>
    %22 = vector.multi_reduction <add>, %21, %cst_17 [1] : vector<8x256xf32> to vector<8xf32>
    %23 = vector.shape_cast %22 : vector<8xf32> to vector<8x1xf32>
    %cst_18 = arith.constant 2.560000e+02 : f32
    %24 = vector.broadcast %cst_18 : f32 to vector<8x1xf32>
    %25 = arith.divf %23, %24 : vector<8x1xf32>
    %26 = vector.broadcast %18 : vector<8x1xf32> to vector<8x256xf32>
    %27 = arith.subf %10, %26 : vector<8x256xf32>
    %cst_19 = arith.constant 9.99999974E-6 : f32
    %28 = vector.broadcast %cst_19 : f32 to vector<8x1xf32>
    %29 = arith.addf %25, %28 : vector<8x1xf32>
    %30 = math.rsqrt %29 : vector<8x1xf32>
    %31 = vector.broadcast %30 : vector<8x1xf32> to vector<8x256xf32>
    %32 = arith.mulf %27, %31 : vector<8x256xf32>
    %33 = vector.broadcast %12 : vector<1x256xf32> to vector<8x256xf32>
    %34 = arith.mulf %32, %33 : vector<8x256xf32>
    %35 = vector.broadcast %14 : vector<1x256xf32> to vector<8x256xf32>
    %36 = arith.addf %34, %35 : vector<8x256xf32>
    %c0_20 = arith.constant 0 : index
    %c0_21 = arith.constant 0 : index
    %c0_22 = arith.constant 0 : index
    %37 = vector.load %arg7[%c0_20, %c0_21, %c0_22] : memref<1x256x256xf32, #tpu.memory_space<vmem>>, vector<1x256x256xf32>
    %38 = vector.shape_cast %37 : vector<1x256x256xf32> to vector<256x256xf32>
    %cst_23 = arith.constant dense<0.000000e+00> : vector<8x256xf32>
    %39 = tpu.matmul %36, %38, %cst_23 {dimension_numbers = #tpu.dot_dimension_numbers<[1], [0], [0], [1], [0, 0, 1, 1], [], []>} : vector<8x256xf32>, vector<256x256xf32>, vector<8x256xf32> -> vector<8x256xf32>
    %c0_24 = arith.constant 0 : index
    %c0_25 = arith.constant 0 : index
    %c0_26 = arith.constant 0 : index
    %40 = vector.load %arg8[%c0_24, %c0_25, %c0_26] : memref<1x1x256xf32, #tpu.memory_space<vmem>>, vector<1x1x256xf32>
    %41 = vector.shape_cast %40 : vector<1x1x256xf32> to vector<1x256xf32>
    %42 = vector.broadcast %41 : vector<1x256xf32> to vector<8x256xf32>
    %43 = arith.addf %39, %42 : vector<8x256xf32>
    %c0_27 = arith.constant 0 : index
    %c0_28 = arith.constant 0 : index
    %c0_29 = arith.constant 0 : index
    %44 = vector.load %arg9[%c0_27, %c0_28, %c0_29] : memref<1x8x256xf32, #tpu.memory_space<vmem>>, vector<1x8x256xf32>
    %45 = vector.shape_cast %44 : vector<1x8x256xf32> to vector<8x256xf32>
    %46 = vector.shape_cast %43 : vector<8x256xf32> to vector<1x8x256xf32>
    tpu.vector_store %arg9[%c0_27, %c0_28, %c0_29], %46 {strides = array<i32>} : memref<1x8x256xf32, #tpu.memory_space<vmem>>, vector<1x8x256xf32>,
    return
  }
  func.func @transform_0(%arg0: i32, %arg1: i32) -> (i32, i32, i32) {
    %c0_i32 = arith.constant 0 : i32
    %c0_i32_0 = arith.constant 0 : i32
    return %arg0, %arg1, %c0_i32 : i32, i32, i32
  }
  func.func @transform_1(%arg0: i32, %arg1: i32) -> (i32, i32, i32) {
    %c0_i32 = arith.constant 0 : i32
    %c0_i32_0 = arith.constant 0 : i32
    %c0_i32_1 = arith.constant 0 : i32
    return %arg0, %c0_i32, %c0_i32_0 : i32, i32, i32
  }
  func.func @transform_2(%arg0: i32, %arg1: i32) -> (i32, i32, i32) {
    %c0_i32 = arith.constant 0 : i32
    %c0_i32_0 = arith.constant 0 : i32
    %c0_i32_1 = arith.constant 0 : i32
    return %arg0, %c0_i32, %c0_i32_0 : i32, i32, i32
  }
  func.func @transform_3(%arg0: i32, %arg1: i32) -> (i32, i32, i32) {
    %c0_i32 = arith.constant 0 : i32
    %c0_i32_0 = arith.constant 0 : i32
    %c0_i32_1 = arith.constant 0 : i32
    return %arg0, %c0_i32, %c0_i32_0 : i32, i32, i32
  }
  func.func @transform_4(%arg0: i32, %arg1: i32) -> (i32, i32, i32) {
    %c0_i32 = arith.constant 0 : i32
    %c0_i32_0 = arith.constant 0 : i32
    %c0_i32_1 = arith.constant 0 : i32
    return %arg0, %c0_i32, %c0_i32_0 : i32, i32, i32
  }
  func.func @transform_5(%arg0: i32, %arg1: i32) -> (i32, i32, i32) {
    %c0_i32 = arith.constant 0 : i32
    %c0_i32_0 = arith.constant 0 : i32
    %c0_i32_1 = arith.constant 0 : i32
    return %arg0, %c0_i32, %c0_i32_0 : i32, i32, i32
  }
  func.func @transform_6(%arg0: i32, %arg1: i32) -> (i32, i32, i32) {
    %c0_i32 = arith.constant 0 : i32
    %c0_i32_0 = arith.constant 0 : i32
    %c0_i32_1 = arith.constant 0 : i32
    return %arg0, %c0_i32, %c0_i32_0 : i32, i32, i32
  }
  func.func @transform_7(%arg0: i32, %arg1: i32) -> (i32, i32, i32) {
    %c0_i32 = arith.constant 0 : i32
    %c0_i32_0 = arith.constant 0 : i32
    return %arg0, %arg1, %c0_i32 : i32, i32, i32
  }
}

</mosaic_0001>

<bundles_post_ra>
// kernel: tpu_custom_call.1
= control target key start
LH: loop header
LB: loop body
LE: loop exit
PB: predicated region body
PF: predicated region fallthrough
CT: control target
= control target key end

     0   :  { %s2851_s0 = inlined_call_operand.hbm [shape: f32[2,8,768], index: 0, kind: input, shape index: {}]   ;;  %s2852_s1 = inlined_call_operand.hbm [shape: f32[2,768,256], index: 1, kind: input, shape index: {}]   ;;  %s2853_s2 = inlined_call_operand.hbm [shape: f32[2,1,256], index: 2, kind: input, shape index: {}]   ;;  %s2854_s3 = inlined_call_operand.hbm [shape: f32[2,1,256], index: 3, kind: input, shape index: {}]   ;;  %s2855_s4 = inlined_call_operand.hbm [shape: f32[2,1,256], index: 4, kind: input, shape index: {}]   ;;  %s2856_s5 = inlined_call_operand.hbm [shape: f32[2,256,256], index: 5, kind: input, shape index: {}]   ;;  %s2857_s6 = inlined_call_operand.hbm [shape: f32[2,1,256], index: 6, kind: input, shape index: {}]   ;;  %s2858_s7 = inlined_call_operand.hbm [shape: f32[2,8,256], index: 7, kind: output, shape index: {}]  }
   0x1   :  { %2875 = sst [smem:[#allocation28_spill]] %s2852_s1 }
   0x2   :  { %2876 = sst [smem:[#allocation29_spill]] %s2854_s3 }
   0x3   :  { %2877 = sst [smem:[#allocation30_spill]] %s2856_s5 }
   0x4   :  { %2878 = sst [smem:[#allocation31_spill]] %s2858_s7 }
   0x5   :  { %12 = vsyncpa [#allocation3], 0 }
   0x6   :  { %14 = vsyncpa [#allocation3 + $0x1], 0 }
   0x7   :  { %15 = vsyncpa [#allocation6], 0 }
   0x8   :  { %17 = vsyncpa [#allocation6 + $0x1], 0 }
   0x9   :  { %18 = vsyncpa [#allocation9], 0 }
   0xa   :  { %20 = vsyncpa [#allocation9 + $0x1], 0 }
   0xb   :  { %21 = vsyncpa [#allocation12], 0 }
   0xc   :  { %23 = vsyncpa [#allocation12 + $0x1], 0 }
   0xd   :  { %24 = vsyncpa [#allocation4], 0 }
   0xe   :  { %26 = vsyncpa [#allocation4 + $0x1], 0  ;;  %s2144_s24 = smov 0   ;;  %s2146_s25 = smov 0  }
   0xf   :  { %s2148_s26 = smov 0   ;;  %s2150_s27 = smov 0  }
  0x10   :  { %s2152_s28 = smov 0   ;;  %s2154_s29 = smov 0  }
  0x11 LB: > { %2879 = sst [smem:[#allocation20_spill]] %s2072_s24  ;;  %s2175_s30 = sadd.s32 4294967295, %s2092_s29   ;;  %s2092_s29 = sphi %s2154_s29, %s32_s29   ;;  %s2088_s28 = sphi %s2152_s28, %s2922_s28   ;;  %s2084_s27 = sphi %s2150_s27, %s2921_s27   ;;  %s2080_s26 = sphi %s2148_s26, %s2920_s26   ;;  %s2076_s25 = sphi %s2146_s25, %s2919_s25   ;;  %s2072_s24 = sphi %s2144_s24, %s2918_s24  }
  0x12   : > { %2880 = sst [smem:[#allocation21_spill]] %s2080_s26  ;;  %s1386_s8 = sadd.s32 4294967294, %s2092_s29  }
  0x13   : > { %2881 = sst [smem:[#allocation22_spill]] %s2084_s27  ;;  %s44_s9 = sadd.s32 1, %s2088_s28 }
  0x14   : > { %2882 = sst [smem:[#allocation23_spill]] %s2092_s29  ;;  %s53_s10 = sadd.s32 1, %s2080_s26 }
  0x15   : > { %p46_p0 = scmp.ge.s32.totalorder %s44_s9, 2  ;;  %p60_p1 = scmp.ne.s32.totalorder %s2080_s26, %s2076_s25 }
  0x16   : > { %p61_p2 = scmp.eq.s32.totalorder %s2092_s29, 0  ;;  %p66_p3 = scmp.ne.s32.totalorder %s2076_s25, %s2072_s24 }
  0x17   : > { %s2924_s9 = smov (%p46_p0, %s44_s9), 0  ;;  %p67_p5 = scmp.eq.s32.totalorder %s2175_s30, 0 }
  0x18   : > { %2883 = sst [smem:[#allocation24_spill]] %s2924_s9  ;;  %p2187_p4 = por %p61_p2, %p60_p1 }
  0x19   : > { %s48_s12 = ssub.s32 %s2088_s28, %s2924_s9  ;;  %p248_p6 = scmp.eq.s32.totalorder %s2175_s30, 1 }
  0x1a   : > { %p51_p7 = scmp.eq.s32.totalorder %s48_s12, 0  ;;  %p2195_p8 = por %p67_p5, %p66_p3 }
  0x1b   : > { %p2199_p9 = por %p248_p6, %p60_p1  ;;  %p254_p10 = scmp.eq.s32.totalorder %s1386_s8, 1 }
  0x1c   : > { %s2885_s13 = scalar_select %p2195_p8, 1, 0 }
  0x1d   : > { %s2886_s14 = scalar_select %p2199_p9, 1, 0 }
  0x1e   : > { %s2204_s15 = scalar_select %p51_p7, %s2080_s26, %s53_s10  }
  0x1f   : > { %2887 = sst [smem:[#allocation25_spill]] %s2886_s14  ;;  %p2206_p11 = por %p254_p10, %p66_p3 }
  0x20   : > { %2888 = sst [smem:[#allocation26_spill]] %s2204_s15  ;;  %p1734_p13 = scmp.lt.s32.totalorder %s2092_s29, 2 }
  0x21   : > { %s2889_s16 = scalar_select %p2206_p11, 1, 0 }
  0x22   : > { %s2213_s17 = sand.u32 1, %s2080_s26   ;;  %s2216_s18 = sand.u32 1, %s2092_s29  }
  0x23   : > { %2890 = sst [smem:[#allocation27_spill]] %s2889_s16  ;;  %s1688_s19 = smul.u32 1536, %s2213_s17 }
  0x24   : > { %p2221_p0 = pnand %p1734_p13, %p2187_p4  ;;  %s1689_s21 = smul.u32 24576, %s2088_s28 }
  0x25   : > { %s299_s22 = scalar_lea.vmem [#allocation5], %s1688_s19  ;;  %s2892_s1 = sld [smem:[#allocation28_spill]] }
  0x26   : > { %s2891_s20 = scalar_select %p2221_p0, 1, 0 }
  0x27   : > { %s306_s23 = sshll.u32 %s299_s22, 4  ;;  %p2238_p2 = pneg %p2221_p0  ;;  %s2231_s23 = int_to_ptr.vmem [resolvable:$true] %s306_s23 }
  0x2b   : > { %s2229_s12 = scalar_lea.hbm %s2892_s1, %s1689_s21  ;;  %s1793_s22 = scalar_lea.hbm %s2892_s1, 49152 }
  0x2c   : > { %s1788_s9 = scalar_lea.hbm %s2229_s12, 24576  ;;  %p1794_p5 = scmp.lt.u32.totalorder %s2229_s12, %s2892_s1 }
  0x2d   : > { %p1789_p1 = scmp.ne.s32.totalorder %s2229_s12, %s1788_s9  ;;  %p1795_p6 = scmp.lt.u32.totalorder %s1793_s22, %s1788_s9 }
  0x2e   : > { %p1797_p10 = scmp.lt.u32.totalorder %s1788_s9, %s2229_s12 }
  0x2f   : > { %p1791_p3 = pnand %p2238_p2, %p1789_p1  ;;  %p1796_p7 = por %p1795_p6, %p1794_p5 }
  0x31   : > { %p1792_p4 = pneg %p1791_p3  ;;  %p1798_p13 = por %p1797_p10, %p1796_p7 }
  0x33   : > { %p1799_p12 = pnand %p1798_p13, %p1792_p4 }
  0x35   : > { %1802 = shalt.err (!%p1799_p12)
}
  0x36   : > { %s1803_s11 = scalar_lea.vmem %s2231_s23, 24576  ;;  %s2094_s19 = smov [#allocation5]  }
  0x37   : > { %p1804_p1 = scmp.ne.s32.totalorder %s2231_s23, %s1803_s11  ;;  %s1808_s21 = sshll.u32 %s2094_s19, 4  ;;  %s1809_s21 = int_to_ptr.vmem [resolvable:$false] %s1808_s21 }
  0x38   : > { %s1810_s8 = scalar_lea.vmem %s1809_s21, 49152  ;;  %p1811_p9 = scmp.lt.s32.totalorder %s2231_s23, %s1809_s21 }
  0x39   : > { %p1806_p3 = pnand %p1804_p1, %p2238_p2  ;;  %p1812_p8 = scmp.lt.s32.totalorder %s1810_s8, %s1803_s11 }
  0x3b   : > { %p1807_p11 = pneg %p1806_p3  ;;  %p1813_p5 = por %p1812_p8, %p1811_p9 }
  0x3d   : > { %p1814_p6 = pnand %p1813_p5, %p1807_p11 }
  0x3f   : > { %1817 = shalt.err (!%p1814_p6)
}
  0x40   : > { %s2863_s9 = smov 256   ;;  %s2864_s22 = smov 16  }
  0x41   : > { %s2894_s11 = scalar_lea.sflag [#allocation6], %s2216_s18  ;;  %p1406_p8 = scmp.ge.s32.totalorder %s2092_s29, 1 }
  0x42   : > { %1714 = dma.hbm_to_vmem [thread:$0]  (!%p2221_p0), %s2229_s12, 24576, %s2231_s23, %s2894_s11, %s2863_s9, %s2863_s9, %s2864_s22  }
  0x43   : > { %p411_p9 = scmp.lt.s32.totalorder %s2092_s29, 3  ;;  %s2269_s10 = sshll.u32 %s2213_s17, 1 }
  0x44   : > { %s2272_s19 = sshll.u32 %s2088_s28, 5  ;;  %s2896_s3 = sld [smem:[#allocation29_spill]] }
  0x45   : > { %p2274_p11 = pnand %p1406_p8, %p411_p9  ;;  %s339_s23 = scalar_lea.vmem [#allocation8], %s2269_s10 }
  0x46   : > { %s347_s12 = sshll.u32 %s339_s23, 4  ;;  %s1400_s11 = sshll.u32 %s2213_s17, 9  ;;  %s2285_s12 = int_to_ptr.vmem [resolvable:$true] %s347_s12 }
  0x47   : > { %s2895_s21 = scalar_select %p2274_p11, 1, 0 }
  0x48   : > { %s2869_s9 = scalar_lea.sflag [#allocation9], %s2216_s18 }
  0x4a   : > { %s2282_s26 = scalar_lea.hbm %s2896_s3, %s2272_s19  ;;  %s1823_s1 = scalar_lea.hbm %s2896_s3, 64 }
  0x4b   : > { %s1818_s22 = scalar_lea.hbm %s2282_s26, 32  ;;  %p1824_p10 = scmp.lt.u32.totalorder %s2282_s26, %s2896_s3 }
  0x4c   : > { %p1819_p12 = scmp.ne.s32.totalorder %s2282_s26, %s1818_s22  ;;  %p1825_p13 = scmp.lt.u32.totalorder %s1823_s1, %s1818_s22 }
  0x4d   : > { %p1827_p3 = scmp.lt.u32.totalorder %s1818_s22, %s2282_s26 }
  0x4e   : > { %p1821_p4 = pnand %p1819_p12, %p2238_p2  ;;  %p1826_p1 = por %p1825_p13, %p1824_p10 }
  0x50   : > { %p1822_p7 = pneg %p1821_p4  ;;  %p1828_p5 = por %p1827_p3, %p1826_p1 }
  0x52   : > { %p1829_p6 = pnand %p1828_p5, %p1822_p7 }
  0x54   : > { %1832 = shalt.err (!%p1829_p6)
}
  0x55   : > { %s1833_s23 = scalar_lea.vmem %s2285_s12, 32  ;;  %s2097_s29 = smov [#allocation8]  }
  0x56   : > { %p1834_p8 = scmp.ne.s32.totalorder %s2285_s12, %s1833_s23  ;;  %s1838_s16 = sshll.u32 %s2097_s29, 4  ;;  %s1839_s16 = int_to_ptr.vmem [resolvable:$false] %s1838_s16 }
  0x57   : > { %s1840_s24 = scalar_lea.vmem %s1839_s16, 64  ;;  %p1841_p4 = scmp.lt.s32.totalorder %s2285_s12, %s1839_s16 }
  0x58   : > { %p1836_p9 = pnand %p1834_p8, %p2238_p2  ;;  %p1842_p11 = scmp.lt.s32.totalorder %s1840_s24, %s1833_s23 }
  0x5a   : > { %p1837_p12 = pneg %p1836_p9  ;;  %p1843_p10 = por %p1842_p11, %p1841_p4 }
  0x5c   : > { %p1844_p13 = pnand %p1843_p10, %p1837_p12 }
  0x5e   : > { %1847 = shalt.err (!%p1844_p13)
}
  0x5f   : > { %1720 = dma.hbm_to_vmem [thread:$0]  (!%p2221_p0), %s2282_s26, 32, %s2285_s12, %s2869_s9  }
  0x60   : > { %s1421_s22 = sshll.u32 %s2088_s28, 13  ;;  %s2897_s5 = sld [smem:[#allocation30_spill]] }
  0x61   : > { %s377_s23 = scalar_lea.vmem [#allocation11], %s1400_s11  ;;  %s374_s24 = scalar_lea.sflag [#allocation12], %s2216_s18 }
  0x62   : > { %s384_s16 = sshll.u32 %s377_s23, 4  ;;  %s2320_s16 = int_to_ptr.vmem [resolvable:$true] %s384_s16 }
  0x66   : > { %s2316_s29 = scalar_lea.hbm %s2897_s5, %s1421_s22  ;;  %s1853_s22 = scalar_lea.hbm %s2897_s5, 16384 }
  0x67   : > { %s1848_s3 = scalar_lea.hbm %s2316_s29, 8192  ;;  %p1854_p3 = scmp.lt.u32.totalorder %s2316_s29, %s2897_s5 }
  0x68   : > { %p1849_p11 = scmp.ne.s32.totalorder %s2316_s29, %s1848_s3  ;;  %p1855_p5 = scmp.lt.u32.totalorder %s1853_s22, %s1848_s3 }
  0x69   : > { %p1857_p8 = scmp.lt.u32.totalorder %s1848_s3, %s2316_s29 }
  0x6a   : > { %p1851_p7 = pnand %p1849_p11, %p2238_p2  ;;  %p1856_p6 = por %p1855_p5, %p1854_p3 }
  0x6c   : > { %p1852_p1 = pneg %p1851_p7  ;;  %p1858_p9 = por %p1857_p8, %p1856_p6 }
  0x6e   : > { %p1859_p12 = pnand %p1858_p9, %p1852_p1 }
  0x70   : > { %1862 = shalt.err (!%p1859_p12)
}
  0x71   : > { %s1863_s11 = scalar_lea.vmem %s2320_s16, 8192  ;;  %s2098_s23 = smov [#allocation11]  }
  0x72   : > { %p1864_p4 = scmp.ne.s32.totalorder %s2320_s16, %s1863_s11  ;;  %s1868_s26 = sshll.u32 %s2098_s23, 4  ;;  %s1869_s26 = int_to_ptr.vmem [resolvable:$false] %s1868_s26 }
  0x73   : > { %s1870_s12 = scalar_lea.vmem %s1869_s26, 16384  ;;  %p1871_p11 = scmp.lt.s32.totalorder %s2320_s16, %s1869_s26 }
  0x74   : > { %p1866_p10 = pnand %p1864_p4, %p2238_p2  ;;  %p1872_p7 = scmp.lt.s32.totalorder %s1870_s12, %s1863_s11 }
  0x76   : > { %p1867_p13 = pneg %p1866_p10  ;;  %p1873_p3 = por %p1872_p7, %p1871_p11 }
  0x78   : > { %p1874_p5 = pnand %p1873_p3, %p1867_p13 }
  0x7a   : > { %1877 = shalt.err (!%p1874_p5)
}
  0x7b   : > { %s2898_s3 = smov 16   ;;  %s2899_s22 = smov 256  }
  0x7c   : > { %1726 = dma.hbm_to_vmem [thread:$0]  (!%p2221_p0), %s2316_s29, 8192, %s2320_s16, %s374_s24, %s2899_s22, %s2899_s22, %s2898_s3  }
  0x7d   : > { %s1686_s1 = smul.u32 48, %s2213_s17  ;;  %s2355_s26 = scalar_lea.hbm %s2853_s2, %s2272_s19 }
  0x7e   : > { %s1687_s8 = smul.u32 768, %s2088_s28  ;;  %s320_s12 = scalar_lea.vmem [#allocation7], %s2269_s10 }
  0x7f   : > { %s328_s9 = sshll.u32 %s320_s12, 4  ;;  %s278_s27 = scalar_lea.vmem [#allocation2], %s1686_s1  ;;  %s2365_s9 = int_to_ptr.vmem [resolvable:$true] %s328_s9 }
  0x80   : > { %s2361_s14 = scalar_lea.hbm %s2851_s0, %s1687_s8  ;;  %s288_s29 = sshll.u32 %s278_s27, 4  ;;  %s2363_s29 = int_to_ptr.vmem [resolvable:$true] %s288_s29 }
  0x81   : > { %s275_s16 = scalar_lea.sflag [#allocation3], %s2213_s17  ;;  %s1878_s3 = scalar_lea.hbm %s2361_s14, 768 }
  0x82   : > { %p1879_p1 = scmp.ne.s32.totalorder %s2361_s14, %s1878_s3  ;;  %s1883_s7 = scalar_lea.hbm %s2851_s0, 1536 }
  0x83   : > { %p1884_p9 = scmp.lt.u32.totalorder %s2361_s14, %s2851_s0  ;;  %p1885_p12 = scmp.lt.u32.totalorder %s1883_s7, %s1878_s3 }
  0x84   : > { %p1881_p6 = pnand %p1879_p1, %p2238_p2  ;;  %p1887_p10 = scmp.lt.u32.totalorder %s1878_s3, %s2361_s14 }
  0x85   : > { %p1886_p4 = por %p1885_p12, %p1884_p9 }
  0x86   : > { %p1882_p8 = pneg %p1881_p6 }
  0x87   : > { %p1888_p13 = por %p1887_p10, %p1886_p4 }
  0x89   : > { %p1889_p11 = pnand %p1888_p13, %p1882_p8 }
  0x8b   : > { %1892 = shalt.err (!%p1889_p11)
}
  0x8c   : > { %s1893_s27 = scalar_lea.vmem %s2363_s29, 768  ;;  %s2099_s17 = smov [#allocation2]  }
  0x8d   : > { %p1894_p7 = scmp.ne.s32.totalorder %s2363_s29, %s1893_s27  ;;  %s1898_s1 = sshll.u32 %s2099_s17, 4  ;;  %s1899_s1 = int_to_ptr.vmem [resolvable:$false] %s1898_s1 }
  0x8e   : > { %s1900_s23 = scalar_lea.vmem %s1899_s1, 1536  ;;  %p1901_p1 = scmp.lt.s32.totalorder %s2363_s29, %s1899_s1 }
  0x8f   : > { %p1896_p3 = pnand %p1894_p7, %p2238_p2  ;;  %p1902_p6 = scmp.lt.s32.totalorder %s1900_s23, %s1893_s27 }
  0x91   : > { %p1897_p5 = pneg %p1896_p3  ;;  %p1903_p9 = por %p1902_p6, %p1901_p1 }
  0x93   : > { %p1904_p12 = pnand %p1903_p9, %p1897_p5 }
  0x95   : > { %1907 = shalt.err (!%p1904_p12)
}
  0x96   : > { %1711 = dma.hbm_to_vmem [thread:$0]  (!%p2221_p0), %s2361_s14, 768, %s2363_s29, %s275_s16  }
  0x97   : > { %s1908_s12 = scalar_lea.hbm %s2355_s26, 32  ;;  %s1913_s5 = scalar_lea.hbm %s2853_s2, 64 }
  0x98   : > { %p1909_p8 = scmp.ne.s32.totalorder %s2355_s26, %s1908_s12  ;;  %p1914_p13 = scmp.lt.u32.totalorder %s2355_s26, %s2853_s2 }
  0x99   : > { %p1915_p11 = scmp.lt.u32.totalorder %s1913_s5, %s1908_s12  ;;  %p1917_p3 = scmp.lt.u32.totalorder %s1908_s12, %s2355_s26 }
  0x9a   : > { %p1911_p4 = pnand %p1909_p8, %p2238_p2 }
  0x9b   : > { %p1916_p7 = por %p1915_p11, %p1914_p13 }
  0x9c   : > { %p1912_p10 = pneg %p1911_p4 }
  0x9d   : > { %p1918_p5 = por %p1917_p3, %p1916_p7 }
  0x9f   : > { %p1919_p1 = pnand %p1918_p5, %p1912_p10 }
  0xa1   : > { %1922 = shalt.err (!%p1919_p1)
}
  0xa2   : > { %s1923_s14 = scalar_lea.vmem %s2365_s9, 32  ;;  %s2100_s29 = smov [#allocation7]  }
  0xa3   : > { %p1924_p6 = scmp.ne.s32.totalorder %s2365_s9, %s1923_s14  ;;  %s1928_s16 = sshll.u32 %s2100_s29, 4  ;;  %s1929_s16 = int_to_ptr.vmem [resolvable:$false] %s1928_s16 }
  0xa4   : > { %s1930_s11 = scalar_lea.vmem %s1929_s16, 64  ;;  %p1931_p8 = scmp.lt.s32.totalorder %s2365_s9, %s1929_s16 }
  0xa5   : > { %p1926_p9 = pnand %p1924_p6, %p2238_p2  ;;  %p1932_p4 = scmp.lt.s32.totalorder %s1930_s11, %s1923_s14 }
  0xa7   : > { %p1927_p12 = pneg %p1926_p9  ;;  %p1933_p13 = por %p1932_p4, %p1931_p8 }
  0xa9   : > { %p1934_p11 = pnand %p1933_p13, %p1927_p12 }
  0xab   : > { %1937 = shalt.err (!%p1934_p11)
}
  0xac   : > { %s2900_s27 = scalar_lea.sflag [#allocation6], %s2216_s18  ;;  %s2416_s23 = scalar_lea.hbm %s2855_s4, %s2272_s19 }
  0xad   : > { %1717 = dma.hbm_to_vmem [thread:$0]  (!%p2221_p0), %s2355_s26, 32, %s2365_s9, %s2900_s27  }
  0xae   : > { %s358_s12 = scalar_lea.vmem [#allocation10], %s2269_s10  ;;  %s2423_s7 = scalar_lea.hbm %s2857_s6, %s2272_s19 }
  0xaf   : > { %s366_s3 = sshll.u32 %s358_s12, 4  ;;  %s1938_s8 = scalar_lea.hbm %s2416_s23, 32  ;;  %s367_s3 = int_to_ptr.vmem [resolvable:$true] %s366_s3 }
  0xb0   : > { %p1939_p10 = scmp.ne.s32.totalorder %s2416_s23, %s1938_s8  ;;  %s1943_s14 = scalar_lea.hbm %s2855_s4, 64 }
  0xb1   : > { %p1944_p5 = scmp.lt.u32.totalorder %s2416_s23, %s2855_s4  ;;  %p1945_p1 = scmp.lt.u32.totalorder %s1943_s14, %s1938_s8 }
  0xb2   : > { %p1941_p7 = pnand %p1939_p10, %p2238_p2  ;;  %p1947_p9 = scmp.lt.u32.totalorder %s1938_s8, %s2416_s23 }
  0xb3   : > { %p1946_p6 = por %p1945_p1, %p1944_p5 }
  0xb4   : > { %p1942_p3 = pneg %p1941_p7 }
  0xb5   : > { %p1948_p12 = por %p1947_p9, %p1946_p6 }
  0xb7   : > { %p1949_p8 = pnand %p1948_p12, %p1942_p3 }
  0xb9   : > { %1952 = shalt.err (!%p1949_p8)
}
  0xba   : > { %s1953_s19 = scalar_lea.vmem %s367_s3, 32  ;;  %s2101_s11 = smov [#allocation10]  }
  0xbb   : > { %p1954_p4 = scmp.ne.s32.totalorder %s367_s3, %s1953_s19  ;;  %s1958_s27 = sshll.u32 %s2101_s11, 4  ;;  %s1959_s27 = int_to_ptr.vmem [resolvable:$false] %s1958_s27 }
  0xbc   : > { %s1960_s17 = scalar_lea.vmem %s1959_s27, 64  ;;  %p1961_p10 = scmp.lt.s32.totalorder %s367_s3, %s1959_s27 }
  0xbd   : > { %p1956_p13 = pnand %p1954_p4, %p2238_p2  ;;  %p1962_p7 = scmp.lt.s32.totalorder %s1960_s17, %s1953_s19 }
  0xbf   : > { %p1957_p11 = pneg %p1956_p13  ;;  %p1963_p0 = por %p1962_p7, %p1961_p10 }
  0xc1   : > { %p1964_p1 = pnand %p1963_p0, %p1957_p11 }
  0xc3   : > { %1967 = shalt.err (!%p1964_p1)
}
  0xc4   : > { %p2901_p5 = scmp.ne.s32.totalorder %s2891_s20, 0  ;;  %s2902_s1 = scalar_lea.sflag [#allocation9], %s2216_s18 }
  0xc5   : > { %s398_s12 = scalar_lea.vmem [#allocation13], %s2269_s10  ;;  %s1968_s5 = scalar_lea.hbm %s2423_s7, 32 }
  0xc6   : > { %1723 = dma.hbm_to_vmem [thread:$0]  (!%p2901_p5), %s2416_s23, 32, %s367_s3, %s2902_s1  }
  0xc7   : > { %s406_s22 = sshll.u32 %s398_s12, 4  ;;  %p1969_p3 = scmp.ne.s32.totalorder %s2423_s7, %s1968_s5  ;;  %s407_s22 = int_to_ptr.vmem [resolvable:$true] %s406_s22 }
  0xc8   : > { %s1973_s26 = scalar_lea.hbm %s2857_s6, 64  ;;  %p1974_p9 = scmp.lt.u32.totalorder %s2423_s7, %s2857_s6 }
  0xc9   : > { %p1971_p0 = pnand %p1969_p3, %p2238_p2  ;;  %p1975_p12 = scmp.lt.u32.totalorder %s1973_s26, %s1968_s5 }
  0xca   : > { %p1977_p4 = scmp.lt.u32.totalorder %s1968_s5, %s2423_s7 }
  0xcb   : > { %p1972_p6 = pneg %p1971_p0  ;;  %p1976_p8 = por %p1975_p12, %p1974_p9 }
  0xcd   : > { %p1978_p13 = por %p1977_p4, %p1976_p8 }
  0xcf   : > { %p1979_p11 = pnand %p1978_p13, %p1972_p6 }
  0xd1   : > { %1982 = shalt.err (!%p1979_p11)
}
  0xd2   : > { %s1983_s10 = scalar_lea.vmem %s407_s22, 32  ;;  %s2102_s23 = smov [#allocation13]  }
  0xd3   : > { %p1984_p10 = scmp.ne.s32.totalorder %s407_s22, %s1983_s10  ;;  %s1988_s3 = sshll.u32 %s2102_s23, 4  ;;  %s1989_s3 = int_to_ptr.vmem [resolvable:$false] %s1988_s3 }
  0xd4   : > { %s1990_s16 = scalar_lea.vmem %s1989_s3, 64  ;;  %p1991_p3 = scmp.lt.s32.totalorder %s407_s22, %s1989_s3 }
  0xd5   : > { %p1986_p7 = pnand %p1984_p10, %p2238_p2  ;;  %p1992_p0 = scmp.lt.s32.totalorder %s1990_s16, %s1983_s10 }
  0xd7   : > { %p1987_p1 = pneg %p1986_p7  ;;  %p1993_p5 = por %p1992_p0, %p1991_p3 }
  0xd9   : > { %p1994_p9 = pnand %p1993_p5, %p1987_p1 }
  0xdb   : > { %1997 = shalt.err (!%p1994_p9)
}
  0xdc   : > { %p2903_p12 = scmp.ne.s32.totalorder %s2891_s20, 0  ;;  %p2904_p6 = scmp.ne.s32.totalorder %s2895_s21, 0 }
  0xdd   : > { %s2467_s15 = sand.u32 (!%p2904_p6), 1, %s2076_s25   ;;  %p2905_p2 = scmp.ne.s32.totalorder (!%p2904_p6), %s2885_s13, 0 }
  0xde   : > { %1729 = dma.hbm_to_vmem [thread:$0]  (!%p2903_p12), %s2423_s7, 32, %s407_s22, %s374_s24  }
  0xdf   : > { %415 = sbr.rel (%p2904_p6) target bundleno = 1134 (0x46e), region = 48  ;;  %s418_s11 = scalar_lea.sflag (!%p2904_p6), [#allocation3], %s2467_s15 }
  0xe0   : > { %s1690_s19 = smul.u32 (!%p2904_p6), 48, %s2467_s15 }
  0xe2   : > { %s2471_s27 = scalar_lea.vmem (!%p2904_p6), [#allocation2], %s1690_s19 }
  0xe6   : > { %2051 = dma.done.wait (%p2905_p2), %s418_s11, 768  }
  0xe7   : > { %2053 = vsyncadd (%p2905_p2), %s418_s11, 4294966528  ;;  %s426_s18 = sand.u32 1, %s2175_s30   ;;  %s1691_s20 = smul.u32 1536, %s2467_s15 }
  0xe8   : > { %s427_s21 = scalar_lea.sflag [#allocation6], %s426_s18 }
  0xe9   : > { %s2479_s24 = scalar_lea.vmem [#allocation5], %s1691_s20 }
  0xea   : > { %2055 = dma.done.wait (%p2905_p2), %s427_s21, 24608  }
  0xeb   : > { %2057 = vsyncadd (%p2905_p2), %s427_s21, 4294942688  ;;  %s2486_s7 = sshll.u32 %s2467_s15, 1  ;;  %s445_s1 = scalar_lea.sflag [#allocation9], %s426_s18 }
  0xec   : > { %s439_s17 = scalar_lea.vmem [#allocation7], %s2486_s7  ;;  %s448_s12 = scalar_lea.vmem [#allocation8], %s2486_s7 }
  0xed   : > { %2059 = dma.done.wait (%p2905_p2), %s445_s1, 64  }
  0xee   : > { %2061 = vsyncadd (%p2905_p2), %s445_s1, 4294967232  ;;  %s1410_s30 = sshll.u32 %s2467_s15, 9  ;;  %s457_s22 = scalar_lea.vmem [#allocation10], %s2486_s7 }
  0xef   : > { %s463_s5 = scalar_lea.sflag [#allocation12], %s426_s18  ;;  %s2496_s8 = scalar_lea.vmem [#allocation11], %s1410_s30 }
  0xf0   : > { %2063 = dma.done.wait (%p2905_p2), %s463_s5, 8224  }
  0xf1   : > { %2065 = vsyncadd (%p2905_p2), %s463_s5, 4294959072  ;;  %v607_v0 = vld [vmem:[%s2479_s24 + $0x208] sm:$0xff]  ;;  %v609_v1 = vld [vmem:[%s2479_s24 + $0x218] sm:$0xff]  ;;  %s2906_s13 = sld [smem:[#allocation22_spill]]  ;;  %s1412_s9 = sshll.u32 %s2467_s15, 4 }
  0xf2   : > { %v606_v2 = vld [vmem:[%s2479_s24 + $0x200] sm:$0xff]  ;;  %v1488_v3 = vpack.c.bf16 %v609_v1, %v607_v0  ;;  %v608_v4 = vld [vmem:[%s2479_s24 + $0x210] sm:$0xff]  ;;  %v611_v5 = vld [vmem:[%s2479_s24 + $0x228] sm:$0xff]  ;;  %s475_s26 = scalar_lea.vmem [#allocation13], %s2486_s7  ;;  %s2907_s14 = sld [smem:[#allocation25_spill]] }
  0xf3   : > { %v613_v6 = vld [vmem:[%s2479_s24 + $0x238] sm:$0xff]  ;;  %v1490_v7 = vpack.c.bf16 %v608_v4, %v606_v2  ;;  %v610_v9 = vld [vmem:[%s2479_s24 + $0x220] sm:$0xff]  ;;  %v612_v10 = vld [vmem:[%s2479_s24 + $0x230] sm:$0xff]  ;;  %s535_s10 = scalar_lea.vmem [#allocation14], %s1412_s9  ;;  %s2908_s19 = sld [smem:[#allocation31_spill]] }
  0xf4   : > { %v1492_v8 = vpack.c.bf16 %v613_v6, %v611_v5  ;;  %v615_v11 = vld [vmem:[%s2479_s24 + $0x248] sm:$0xff]  ;;  %1489 = vmatprep.subr.bf16.mxu0 %v1488_v3  ;;  %v617_v12 = vld [vmem:[%s2479_s24 + $0x258] sm:$0xff]  ;;  %v1494_v13 = vpack.c.bf16 %v612_v10, %v610_v9  ;;  %v614_v15 = vld [vmem:[%s2479_s24 + $0x240] sm:$0xff]  ;;  %s1172_s23 = sshll.u32 %s535_s10, 4  ;;  %s2103_s20 = smov [#allocation14]   ;;  %s2804_s23 = int_to_ptr.vmem [resolvable:$true] %s1172_s23 }
  0xf5   : > { %1491 = vmatpush1.bf16.msra.mxu0 %v1490_v7  ;;  %v1496_v14 = vpack.c.bf16 %v617_v12, %v615_v11  ;;  %v616_v16 = vld [vmem:[%s2479_s24 + $0x250] sm:$0xff]  ;;  %v619_v17 = vld [vmem:[%s2479_s24 + $0x268] sm:$0xff]  ;;  %v621_v18 = vld [vmem:[%s2479_s24 + $0x278] sm:$0xff]  ;;  %s1998_s18 = scalar_lea.vmem %s2804_s23, 256  ;;  %s2002_s21 = sshll.u32 %s2103_s20, 4  ;;  %s2003_s21 = int_to_ptr.vmem [resolvable:$false] %s2002_s21 }
  0xf6   : > { %1493 = vmatprep.subr.bf16.mxu0 %v1492_v8  ;;  %v1498_v19 = vpack.c.bf16 %v616_v16, %v614_v15  ;;  %v1500_v20 = vpack.c.bf16 %v621_v18, %v619_v17  ;;  %v618_v21 = vld [vmem:[%s2479_s24 + $0x260] sm:$0xff]  ;;  %v620_v22 = vld [vmem:[%s2479_s24 + $0x270] sm:$0xff]  ;;  %v623_v23 = vld [vmem:[%s2479_s24 + $0x288] sm:$0xff]  ;;  %p1999_p5 = scmp.ne.s32.totalorder %s2804_s23, %s1998_s18  ;;  %p2005_p11 = scmp.lt.s32.totalorder %s2804_s23, %s2003_s21 }
  0xf7   : > { %v625_v24 = vld [vmem:[%s2479_s24 + $0x298] sm:$0xff]  ;;  %v1502_v25 = vpack.c.bf16 %v620_v22, %v618_v21  ;;  %v622_v27 = vld [vmem:[%s2479_s24 + $0x280] sm:$0xff]  ;;  %v624_v28 = vld [vmem:[%s2479_s24 + $0x290] sm:$0xff]  ;;  %s1423_s29 = sshll.u32 %s2906_s13, 8 }
  0xf8   : > { %v1504_v26 = vpack.c.bf16 %v625_v24, %v623_v23  ;;  %v627_v29 = vld [vmem:[%s2479_s24 + $0x2a8] sm:$0xff]  ;;  %v629_v30 = vld [vmem:[%s2479_s24 + $0x2b8] sm:$0xff]  ;;  %v1506_v31 = vpack.c.bf16 %v624_v28, %v622_v27  ;;  %v626_v33 = vld [vmem:[%s2479_s24 + $0x2a0] sm:$0xff]  ;;  %p2909_p8 = scmp.ne.s32.totalorder %s2907_s14, 0 }
  0xf9   : > { %1495 = vmatpush1.bf16.msra.mxu0 %v1494_v13  ;;  %v1508_v32 = vpack.c.bf16 %v629_v30, %v627_v29  ;;  %v628_v34 = vld [vmem:[%s2479_s24 + $0x2b0] sm:$0xff]  ;;  %v631_v35 = vld [vmem:[%s2479_s24 + $0x2c8] sm:$0xff]  ;;  %v633_v36 = vld [vmem:[%s2479_s24 + $0x2d8] sm:$0xff]  ;;  %s2802_s11 = scalar_lea.hbm %s2908_s19, %s1423_s29 }
  0xfa   : > { %1497 = vmatprep.subr.bf16.mxu0 %v1496_v14  ;;  %v1510_v37 = vpack.c.bf16 %v628_v34, %v626_v33  ;;  %v630_v38 = vld [vmem:[%s2479_s24 + $0x2c0] sm:$0xff]  ;;  %v632_v39 = vld [vmem:[%s2479_s24 + $0x2d0] sm:$0xff]  ;;  %v543_v40 = vld [vmem:[%s2479_s24 + $0x8] sm:$0xff]  ;;  %v1512_v41 = vpack.c.bf16 %v633_v36, %v631_v35  ;;  %p2000_p4 = pnand %p1999_p5, %p2909_p8 }
  0xfb   : > { %v635_v42 = vld [vmem:[%s2479_s24 + $0x2e8] sm:$0xff]  ;;  %v637_v43 = vld [vmem:[%s2479_s24 + $0x2f8] sm:$0xff]  ;;  %v542_v46 = vld [vmem:[%s2479_s24] sm:$0xff]  ;;  %v1514_v51 = vpack.c.bf16 %v632_v39, %v630_v38 }
  0xfc   : > { %v545_v44 = vld [vmem:[%s2479_s24 + $0x18] sm:$0xff]  ;;  %v544_v47 = vld [vmem:[%s2479_s24 + $0x10] sm:$0xff]  ;;  %v547_v50 = vld [vmem:[%s2479_s24 + $0x28] sm:$0xff]  ;;  %v1516_v54 = vpack.c.bf16 %v637_v43, %v635_v42  ;;  %p2001_p13 = pneg %p2000_p4 }
  0xfd   : > { %1499 = vmatpush1.bf16.msra.mxu0 %v1498_v19  ;;  %v1424_v45 = vpack.c.bf16 %v545_v44, %v543_v40  ;;  %v539_v48 = vld [vmem:[%s2471_s27 + $0x18] sm:$0xff]  ;;  %v1426_v49 = vpack.c.bf16 %v544_v47, %v542_v46  ;;  %v634_v52 = vld [vmem:[%s2479_s24 + $0x2e0] sm:$0xff]  ;;  %v636_v55 = vld [vmem:[%s2479_s24 + $0x2f0] sm:$0xff] }
  0xfe   : > { %1501 = vmatprep.subr.bf16.mxu0 %v1500_v20  ;;  %881 = vmatprep.mubr.f32.mxu0 %v539_v48  ;;  %v549_v53 = vld [vmem:[%s2479_s24 + $0x38] sm:$0xff]  ;;  %v546_v57 = vld [vmem:[%s2479_s24 + $0x20] sm:$0xff]  ;;  %v548_v58 = vld [vmem:[%s2479_s24 + $0x30] sm:$0xff]  ;;  %v1518_v0 = vpack.c.bf16 %v636_v55, %v634_v52 }
  0xff   : > { %1425 = vmatprep.subr.bf16.mxu1 %v1424_v45  ;;  %v1428_v56 = vpack.c.bf16 %v549_v53, %v547_v50  ;;  %v639_v59 = vld [vmem:[%s2479_s24 + $0x308] sm:$0xff]  ;;  %v641_v60 = vld [vmem:[%s2479_s24 + $0x318] sm:$0xff]  ;;  %v1430_v61 = vpack.c.bf16 %v548_v58, %v546_v57  ;;  %v638_v1 = vld [vmem:[%s2479_s24 + $0x300] sm:$0xff] }
 0x100   : > { %1427 = vmatpush1.bf16.msra.mxu1 %v1426_v49  ;;  %v551_v62 = vld [vmem:[%s2479_s24 + $0x48] sm:$0xff]  ;;  %v553_v63 = vld [vmem:[%s2479_s24 + $0x58] sm:$0xff]  ;;  %v550_v3 = vld [vmem:[%s2479_s24 + $0x40] sm:$0xff]  ;;  %v1520_v5 = vpack.c.bf16 %v641_v60, %v639_v59 }
 0x101   : > { %1503 = vmatpush1.bf16.msra.mxu0 %v1502_v25  ;;  %1429 = vmatprep.subr.bf16.mxu1 %v1428_v56  ;;  %v1432_v2 = vpack.c.bf16 %v553_v63, %v551_v62  ;;  %v552_v4 = vld [vmem:[%s2479_s24 + $0x50] sm:$0xff]  ;;  %v555_v8 = vld [vmem:[%s2479_s24 + $0x68] sm:$0xff]  ;;  %v557_v9 = vld [vmem:[%s2479_s24 + $0x78] sm:$0xff] }
 0x102   : > { %1505 = vmatprep.subr.bf16.mxu0 %v1504_v26  ;;  %v640_v6 = vld [vmem:[%s2479_s24 + $0x310] sm:$0xff]  ;;  %v1434_v7 = vpack.c.bf16 %v552_v4, %v550_v3  ;;  %v643_v10 = vld [vmem:[%s2479_s24 + $0x328] sm:$0xff]  ;;  %v645_v11 = vld [vmem:[%s2479_s24 + $0x338] sm:$0xff]  ;;  %v1436_v12 = vpack.c.bf16 %v557_v9, %v555_v8 }
 0x103   : > { %v554_v13 = vld [vmem:[%s2479_s24 + $0x60] sm:$0xff]  ;;  %v556_v14 = vld [vmem:[%s2479_s24 + $0x70] sm:$0xff]  ;;  %v1522_v15 = vpack.c.bf16 %v640_v6, %v638_v1  ;;  %v559_v16 = vld [vmem:[%s2479_s24 + $0x88] sm:$0xff]  ;;  %v1524_v18 = vpack.c.bf16 %v645_v11, %v643_v10 }
 0x104   : > { %1431 = vmatpush1.bf16.msra.mxu1 %v1430_v61  ;;  %v561_v17 = vld [vmem:[%s2479_s24 + $0x98] sm:$0xff]  ;;  %v642_v19 = vld [vmem:[%s2479_s24 + $0x320] sm:$0xff]  ;;  %v644_v20 = vld [vmem:[%s2479_s24 + $0x330] sm:$0xff]  ;;  %v1438_v22 = vpack.c.bf16 %v556_v14, %v554_v13 }
 0x105   : > { %1507 = vmatpush1.bf16.msra.mxu0 %v1506_v31  ;;  %1433 = vmatprep.subr.bf16.mxu1 %v1432_v2  ;;  %v647_v21 = vld [vmem:[%s2479_s24 + $0x348] sm:$0xff]  ;;  %v649_v23 = vld [vmem:[%s2479_s24 + $0x358] sm:$0xff]  ;;  %v1440_v24 = vpack.c.bf16 %v561_v17, %v559_v16  ;;  %v558_v25 = vld [vmem:[%s2479_s24 + $0x80] sm:$0xff]  ;;  %v1526_v29 = vpack.c.bf16 %v644_v20, %v642_v19 }
 0x106   : > { %1509 = vmatprep.subr.bf16.mxu0 %v1508_v32  ;;  %v560_v26 = vld [vmem:[%s2479_s24 + $0x90] sm:$0xff]  ;;  %v563_v27 = vld [vmem:[%s2479_s24 + $0xa8] sm:$0xff]  ;;  %v565_v28 = vld [vmem:[%s2479_s24 + $0xb8] sm:$0xff]  ;;  %v1528_v30 = vpack.c.bf16 %v649_v23, %v647_v21 }
 0x107   : > { %v646_v31 = vld [vmem:[%s2479_s24 + $0x340] sm:$0xff]  ;;  %v648_v32 = vld [vmem:[%s2479_s24 + $0x350] sm:$0xff]  ;;  %v651_v33 = vld [vmem:[%s2479_s24 + $0x368] sm:$0xff]  ;;  %v1442_v34 = vpack.c.bf16 %v560_v26, %v558_v25  ;;  %v1444_v36 = vpack.c.bf16 %v565_v28, %v563_v27 }
 0x108   : > { %1435 = vmatpush1.bf16.msra.mxu1 %v1434_v7  ;;  %v653_v35 = vld [vmem:[%s2479_s24 + $0x378] sm:$0xff]  ;;  %v564_v38 = vld [vmem:[%s2479_s24 + $0xb0] sm:$0xff]  ;;  %v567_v39 = vld [vmem:[%s2479_s24 + $0xc8] sm:$0xff] }
 0x109   : > { %1511 = vmatpush1.bf16.msra.mxu0 %v1510_v37  ;;  %1437 = vmatprep.subr.bf16.mxu1 %v1436_v12  ;;  %v562_v37 = vld [vmem:[%s2479_s24 + $0xa0] sm:$0xff]  ;;  %v569_v40 = vld [vmem:[%s2479_s24 + $0xd8] sm:$0xff]  ;;  %v1532_v42 = vpack.c.bf16 %v653_v35, %v651_v33  ;;  %v652_v44 = vld [vmem:[%s2479_s24 + $0x370] sm:$0xff] }
 0x10a   : > { %1513 = vmatprep.subr.bf16.mxu0 %v1512_v41  ;;  %v1530_v41 = vpack.c.bf16 %v648_v32, %v646_v31  ;;  %v650_v43 = vld [vmem:[%s2479_s24 + $0x360] sm:$0xff]  ;;  %v655_v45 = vld [vmem:[%s2479_s24 + $0x388] sm:$0xff]  ;;  %v1446_v46 = vpack.c.bf16 %v564_v38, %v562_v37  ;;  %v657_v47 = vld [vmem:[%s2479_s24 + $0x398] sm:$0xff]  ;;  %v1448_v48 = vpack.c.bf16 %v569_v40, %v567_v39 }
 0x10b   : > { %v566_v49 = vld [vmem:[%s2479_s24 + $0xc0] sm:$0xff]  ;;  %v568_v50 = vld [vmem:[%s2479_s24 + $0xd0] sm:$0xff]  ;;  %v573_v52 = vld [vmem:[%s2479_s24 + $0xf8] sm:$0xff]  ;;  %v1534_v53 = vpack.c.bf16 %v652_v44, %v650_v43 }
 0x10c   : > { %1439 = vmatpush1.bf16.msra.mxu1 %v1438_v22  ;;  %v654_v55 = vld [vmem:[%s2479_s24 + $0x380] sm:$0xff]  ;;  %v656_v56 = vld [vmem:[%s2479_s24 + $0x390] sm:$0xff]  ;;  %v659_v57 = vld [vmem:[%s2479_s24 + $0x3a8] sm:$0xff]  ;;  %v1450_v58 = vpack.c.bf16 %v568_v50, %v566_v49 }
 0x10d   : > { %1515 = vmatpush1.bf16.msra.mxu0 %v1514_v51  ;;  %1441 = vmatprep.subr.bf16.mxu1 %v1440_v24  ;;  %v571_v51 = vld [vmem:[%s2479_s24 + $0xe8] sm:$0xff]  ;;  %v661_v59 = vld [vmem:[%s2479_s24 + $0x3b8] sm:$0xff]  ;;  %v570_v61 = vld [vmem:[%s2479_s24 + $0xe0] sm:$0xff]  ;;  %v1538_v1 = vpack.c.bf16 %v656_v56, %v654_v55 }
 0x10e   : > { %1517 = vmatprep.subr.bf16.mxu0 %v1516_v54  ;;  %v1536_v54 = vpack.c.bf16 %v657_v47, %v655_v45  ;;  %v1452_v60 = vpack.c.bf16 %v573_v52, %v571_v51  ;;  %v572_v62 = vld [vmem:[%s2479_s24 + $0xf0] sm:$0xff]  ;;  %v575_v63 = vld [vmem:[%s2479_s24 + $0x108] sm:$0xff]  ;;  %v1540_v2 = vpack.c.bf16 %v661_v59, %v659_v57  ;;  %v658_v3 = vld [vmem:[%s2479_s24 + $0x3a0] sm:$0xff] }
 0x10f   : > { %v660_v4 = vld [vmem:[%s2479_s24 + $0x3b0] sm:$0xff]  ;;  %v1454_v6 = vpack.c.bf16 %v572_v62, %v570_v61  ;;  %v665_v7 = vld [vmem:[%s2479_s24 + $0x3d8] sm:$0xff]  ;;  %v574_v9 = vld [vmem:[%s2479_s24 + $0x100] sm:$0xff] }
 0x110   : > { %1443 = vmatpush1.bf16.msra.mxu1 %v1442_v34  ;;  %v576_v10 = vld [vmem:[%s2479_s24 + $0x110] sm:$0xff]  ;;  %v579_v11 = vld [vmem:[%s2479_s24 + $0x128] sm:$0xff]  ;;  %v581_v12 = vld [vmem:[%s2479_s24 + $0x138] sm:$0xff]  ;;  %v1542_v13 = vpack.c.bf16 %v660_v4, %v658_v3 }
 0x111   : > { %1519 = vmatpush1.bf16.msra.mxu0 %v1518_v0  ;;  %1445 = vmatprep.subr.bf16.mxu1 %v1444_v36  ;;  %v577_v0 = vld [vmem:[%s2479_s24 + $0x118] sm:$0xff]  ;;  %v664_v16 = vld [vmem:[%s2479_s24 + $0x3d0] sm:$0xff]  ;;  %v667_v17 = vld [vmem:[%s2479_s24 + $0x3e8] sm:$0xff]  ;;  %v1460_v20 = vpack.c.bf16 %v581_v12, %v579_v11 }
 0x112   : > { %1521 = vmatprep.subr.bf16.mxu0 %v1520_v5  ;;  %v663_v5 = vld [vmem:[%s2479_s24 + $0x3c8] sm:$0xff]  ;;  %v1456_v8 = vpack.c.bf16 %v577_v0, %v575_v63  ;;  %v669_v19 = vld [vmem:[%s2479_s24 + $0x3f8] sm:$0xff]  ;;  %v578_v21 = vld [vmem:[%s2479_s24 + $0x120] sm:$0xff] }
 0x113   : > { %v1544_v14 = vpack.c.bf16 %v665_v7, %v663_v5  ;;  %v580_v22 = vld [vmem:[%s2479_s24 + $0x130] sm:$0xff]  ;;  %v583_v23 = vld [vmem:[%s2479_s24 + $0x148] sm:$0xff]  ;;  %v585_v24 = vld [vmem:[%s2479_s24 + $0x158] sm:$0xff]  ;;  %v1548_v26 = vpack.c.bf16 %v669_v19, %v667_v17 }
 0x114   : > { %1447 = vmatpush1.bf16.msra.mxu1 %v1446_v46  ;;  %v666_v27 = vld [vmem:[%s2479_s24 + $0x3e0] sm:$0xff]  ;;  %v668_v28 = vld [vmem:[%s2479_s24 + $0x3f0] sm:$0xff]  ;;  %v673_v31 = vld [vmem:[%s2479_s24 + $0x418] sm:$0xff]  ;;  %v1464_v32 = vpack.c.bf16 %v585_v24, %v583_v23 }
 0x115   : > { %1523 = vmatpush1.bf16.msra.mxu0 %v1522_v15  ;;  %1449 = vmatprep.subr.bf16.mxu1 %v1448_v48  ;;  %v662_v15 = vld [vmem:[%s2479_s24 + $0x3c0] sm:$0xff]  ;;  %v584_v34 = vld [vmem:[%s2479_s24 + $0x150] sm:$0xff]  ;;  %v587_v35 = vld [vmem:[%s2479_s24 + $0x168] sm:$0xff]  ;;  %v1550_v37 = vpack.c.bf16 %v668_v28, %v666_v27 }
 0x116   : > { %1525 = vmatprep.subr.bf16.mxu0 %v1524_v18  ;;  %v1458_v18 = vpack.c.bf16 %v576_v10, %v574_v9  ;;  %v1546_v25 = vpack.c.bf16 %v664_v16, %v662_v15  ;;  %v582_v33 = vld [vmem:[%s2479_s24 + $0x140] sm:$0xff]  ;;  %v589_v36 = vld [vmem:[%s2479_s24 + $0x178] sm:$0xff]  ;;  %v672_v40 = vld [vmem:[%s2479_s24 + $0x410] sm:$0xff] }
 0x117   : > { %v670_v39 = vld [vmem:[%s2479_s24 + $0x400] sm:$0xff]  ;;  %v677_v43 = vld [vmem:[%s2479_s24 + $0x438] sm:$0xff]  ;;  %v1468_v44 = vpack.c.bf16 %v589_v36, %v587_v35  ;;  %v588_v46 = vld [vmem:[%s2479_s24 + $0x170] sm:$0xff] }
 0x118   : > { %1451 = vmatpush1.bf16.msra.mxu1 %v1450_v58  ;;  %v586_v45 = vld [vmem:[%s2479_s24 + $0x160] sm:$0xff]  ;;  %v591_v47 = vld [vmem:[%s2479_s24 + $0x188] sm:$0xff]  ;;  %v593_v48 = vld [vmem:[%s2479_s24 + $0x198] sm:$0xff]  ;;  %v1554_v51 = vpack.c.bf16 %v672_v40, %v670_v39 }
 0x119   : > { %1527 = vmatpush1.bf16.msra.mxu0 %v1526_v29  ;;  %1453 = vmatprep.subr.bf16.mxu1 %v1452_v60  ;;  %v671_v29 = vld [vmem:[%s2479_s24 + $0x408] sm:$0xff]  ;;  %v538_v50 = vld [vmem:[%s2471_s27 + $0x10] sm:$0xff]  ;;  %v1470_v56 = vpack.c.bf16 %v588_v46, %v586_v45  ;;  %v681_v58 = vld [vmem:[%s2479_s24 + $0x458] sm:$0xff]  ;;  %v1472_v59 = vpack.c.bf16 %v593_v48, %v591_v47 }
 0x11a   : > { %1529 = vmatprep.subr.bf16.mxu0 %v1528_v30  ;;  %v1462_v30 = vpack.c.bf16 %v580_v22, %v578_v21  ;;  %v1552_v38 = vpack.c.bf16 %v673_v31, %v671_v29  ;;  %v537_v49 = vld [vmem:[%s2471_s27 + $0x8] sm:$0xff]  ;;  %v674_v52 = vld [vmem:[%s2479_s24 + $0x420] sm:$0xff]  ;;  %v592_v61 = vld [vmem:[%s2479_s24 + $0x190] sm:$0xff] }
 0x11b   : > { %810 = vmatprep.mubr.f32.mxu1 %v537_v49  ;;  %v679_v55 = vld [vmem:[%s2479_s24 + $0x448] sm:$0xff]  ;;  %v590_v60 = vld [vmem:[%s2479_s24 + $0x180] sm:$0xff]  ;;  %v597_v63 = vld [vmem:[%s2479_s24 + $0x1b8] sm:$0xff] }
 0x11c   : > { %1455 = vmatpush1.bf16.msra.mxu1 %v1454_v6  ;;  %v541_v57 = vld [vmem:[%s2471_s27 + $0x28] sm:$0xff]  ;;  %v680_v3 = vld [vmem:[%s2479_s24 + $0x450] sm:$0xff]  ;;  %v1474_v5 = vpack.c.bf16 %v592_v61, %v590_v60  ;;  %v690_v36 = vld [vmem:[%s2479_s24 + $0x4a0] sm:$0xff] }
 0x11d   : > { %1531 = vmatpush1.bf16.msra.mxu0 %v1530_v41  ;;  %1457 = vmatprep.subr.bf16.mxu1 %v1456_v8  ;;  %v675_v41 = vld [vmem:[%s2479_s24 + $0x428] sm:$0xff]  ;;  %v685_v6 = vld [vmem:[%s2479_s24 + $0x478] sm:$0xff]  ;;  %v594_v8 = vld [vmem:[%s2479_s24 + $0x1a0] sm:$0xff] }
 0x11e   : > { %1533 = vmatprep.subr.bf16.mxu0 %v1532_v42  ;;  %v1466_v42 = vpack.c.bf16 %v584_v34, %v582_v33  ;;  %v595_v62 = vld [vmem:[%s2479_s24 + $0x1a8] sm:$0xff]  ;;  %v596_v9 = vld [vmem:[%s2479_s24 + $0x1b0] sm:$0xff]  ;;  %v601_v11 = vld [vmem:[%s2479_s24 + $0x1d8] sm:$0xff] }
 0x11f   : > { %v683_v4 = vld [vmem:[%s2479_s24 + $0x468] sm:$0xff]  ;;  %v1476_v7 = vpack.c.bf16 %v597_v63, %v595_v62  ;;  %v684_v15 = vld [vmem:[%s2479_s24 + $0x470] sm:$0xff]  ;;  %v1478_v17 = vpack.c.bf16 %v596_v9, %v594_v8  ;;  %v605_v23 = vld [vmem:[%s2479_s24 + $0x1f8] sm:$0xff] }
 0x120   : > { %1459 = vmatpush1.bf16.msra.mxu1 %v1458_v18  ;;  %v599_v10 = vld [vmem:[%s2479_s24 + $0x1c8] sm:$0xff]  ;;  %v689_v18 = vld [vmem:[%s2479_s24 + $0x498] sm:$0xff]  ;;  %v600_v21 = vld [vmem:[%s2479_s24 + $0x1d0] sm:$0xff] }
 0x121   : > { %1535 = vmatpush1.bf16.msra.mxu0 %v1534_v53  ;;  %1461 = vmatprep.subr.bf16.mxu1 %v1460_v20  ;;  %v1556_v53 = vpack.c.bf16 %v677_v43, %v675_v41  ;;  %v687_v16 = vld [vmem:[%s2479_s24 + $0x488] sm:$0xff]  ;;  %v1480_v19 = vpack.c.bf16 %v601_v11, %v599_v10  ;;  %v598_v20 = vld [vmem:[%s2479_s24 + $0x1c0] sm:$0xff]  ;;  %v688_v27 = vld [vmem:[%s2479_s24 + $0x490] sm:$0xff] }
 0x122   : > { %1537 = vmatprep.subr.bf16.mxu0 %v1536_v54  ;;  %v676_v54 = vld [vmem:[%s2479_s24 + $0x430] sm:$0xff]  ;;  %v603_v22 = vld [vmem:[%s2479_s24 + $0x1e8] sm:$0xff]  ;;  %v1482_v29 = vpack.c.bf16 %v600_v21, %v598_v20  ;;  %v697_v40 = vld [vmem:[%s2479_s24 + $0x4d8] sm:$0xff] }
 0x123   : > { %v1558_v0 = vpack.c.bf16 %v676_v54, %v674_v52  ;;  %v691_v28 = vld [vmem:[%s2479_s24 + $0x4a8] sm:$0xff]  ;;  %v1484_v31 = vpack.c.bf16 %v605_v23, %v603_v22  ;;  %v604_v33 = vld [vmem:[%s2479_s24 + $0x1f0] sm:$0xff]  ;;  %v694_v43 = vld [vmem:[%s2479_s24 + $0x4c0] sm:$0xff] }
 0x124   : > { %1463 = vmatpush1.bf16.msra.mxu1 %v1462_v30  ;;  %v693_v30 = vld [vmem:[%s2479_s24 + $0x4b8] sm:$0xff]  ;;  %v695_v39 = vld [vmem:[%s2479_s24 + $0x4c8] sm:$0xff]  ;;  %v536_v45 = vld [vmem:[%s2471_s27] sm:$0xff] }
 0x125   : > { %1539 = vmatpush1.bf16.msra.mxu0 %v1538_v1  ;;  %1465 = vmatprep.subr.bf16.mxu1 %v1464_v32  ;;  %v1560_v1 = vpack.c.bf16 %v681_v58, %v679_v55  ;;  %v602_v32 = vld [vmem:[%s2479_s24 + $0x1e0] sm:$0xff]  ;;  %v1572_v35 = vpack.c.bf16 %v693_v30, %v691_v28  ;;  %v699_v46 = vld [vmem:[%s2479_s24 + $0x4e8] sm:$0xff]  ;;  %v701_v47 = vld [vmem:[%s2479_s24 + $0x4f8] sm:$0xff] }
 0x126   : > { %1541 = vmatprep.subr.bf16.mxu0 %v1540_v2  ;;  %v678_v2 = vld [vmem:[%s2479_s24 + $0x440] sm:$0xff]  ;;  %v1580_v49 = vpack.c.bf16 %v701_v47, %v699_v46  ;;  %v703_v52 = vld [vmem:[%s2479_s24 + $0x508] sm:$0xff]  ;;  %v708_v63 = vld [vmem:[%s2479_s24 + $0x530] sm:$0xff] }
 0x127   : > { %v1562_v12 = vpack.c.bf16 %v680_v3, %v678_v2  ;;  %v707_v58 = vld [vmem:[%s2479_s24 + $0x528] sm:$0xff]  ;;  %v706_v62 = vld [vmem:[%s2479_s24 + $0x520] sm:$0xff]  ;;  %v716_v11 = vld [vmem:[%s2479_s24 + $0x570] sm:$0xff] }
 0x128   : > { %1467 = vmatpush1.bf16.msra.mxu1 %v1466_v42  ;;  %v1576_v42 = vpack.c.bf16 %v697_v40, %v695_v39  ;;  %v1590_v2 = vpack.c.bf16 %v708_v63, %v706_v62  ;;  %v714_v10 = vld [vmem:[%s2479_s24 + $0x560] sm:$0xff]  ;;  %v724_v23 = vld [vmem:[%s2479_s24 + $0x5b0] sm:$0xff]  ;;  %v731_v30 = vld [vmem:[%s2479_s24 + $0x5e8] sm:$0xff]  ;;  %v736_v40 = vlaneseq }
 0x129   : > { %1543 = vmatpush1.bf16.msra.mxu0 %v1542_v13  ;;  %1469 = vmatprep.subr.bf16.mxu1 %v1468_v44  ;;  %v1564_v13 = vpack.c.bf16 %v685_v6, %v683_v4  ;;  %v696_v44 = vld [vmem:[%s2479_s24 + $0x4d0] sm:$0xff]  ;;  %v710_v4 = vld [vmem:[%s2479_s24 + $0x540] sm:$0xff]  ;;  %v715_v6 = vld [vmem:[%s2479_s24 + $0x568] sm:$0xff] }
 0x12a   : > { %1545 = vmatprep.subr.bf16.mxu0 %v1544_v14  ;;  %v682_v14 = vld [vmem:[%s2479_s24 + $0x460] sm:$0xff]  ;;  %v1578_v48 = vpack.c.bf16 %v696_v44, %v694_v43 }
 0x12b   : > { %v1566_v24 = vpack.c.bf16 %v684_v15, %v682_v14  ;;  %v1598_v14 = vpack.c.bf16 %v716_v11, %v714_v10  ;;  %v722_v22 = vld [vmem:[%s2479_s24 + $0x5a0] sm:$0xff] }
 0x12c   : > { %1471 = vmatpush1.bf16.msra.mxu1 %v1470_v56  ;;  %v702_v56 = vld [vmem:[%s2479_s24 + $0x500] sm:$0xff] }
 0x12d   : > { %1547 = vmatpush1.bf16.msra.mxu0 %v1546_v25  ;;  %1473 = vmatprep.subr.bf16.mxu1 %v1472_v59  ;;  %v1568_v25 = vpack.c.bf16 %v689_v18, %v687_v16  ;;  %v709_v59 = vld [vmem:[%s2479_s24 + $0x538] sm:$0xff]  ;;  %v718_v16 = vld [vmem:[%s2479_s24 + $0x580] sm:$0xff]  ;;  %v723_v18 = vld [vmem:[%s2479_s24 + $0x5a8] sm:$0xff] }
 0x12e   : > { %1549 = vmatprep.subr.bf16.mxu0 %v1548_v26  ;;  %v686_v26 = vld [vmem:[%s2479_s24 + $0x480] sm:$0xff]  ;;  %v1588_v61 = vpack.c.bf16 %v709_v59, %v707_v58  ;;  %v1006_v58 = vld [vmem:[%s2496_s8] sm:$0xff] }
 0x12f   : > { %v1570_v34 = vpack.c.bf16 %v688_v27, %v686_v26  ;;  %v1606_v26 = vpack.c.bf16 %v724_v23, %v722_v22  ;;  %v726_v28 = vld [vmem:[%s2479_s24 + $0x5c0] sm:$0xff] }
 0x130   : > { %1475 = vmatpush1.bf16.msra.mxu1 %v1474_v5  ;;  %v712_v5 = vld [vmem:[%s2479_s24 + $0x550] sm:$0xff]  ;;  %v734_v43 = vld [vmem:[%s439_s17] sm:$0x3]  ;;  %v1013_v62 = vld [vmem:[%s2496_s8 + $0x38] sm:$0xff] }
 0x131   : > { %1551 = vmatpush1.bf16.msra.mxu0 %v1550_v37  ;;  %1477 = vmatprep.subr.bf16.mxu1 %v1476_v7  ;;  %v692_v37 = vld [vmem:[%s2479_s24 + $0x4b0] sm:$0xff]  ;;  %v717_v7 = vld [vmem:[%s2479_s24 + $0x578] sm:$0xff]  ;;  %v1594_v8 = vpack.c.bf16 %v712_v5, %v710_v4  ;;  %v1017_v4 = vld [vmem:[%s2496_s8 + $0x58] sm:$0xff] }
 0x132   : > { %1553 = vmatprep.subr.bf16.mxu0 %v1552_v38  ;;  %v1486_v38 = vpack.c.bf16 %v604_v33, %v602_v32  ;;  %v1574_v41 = vpack.c.bf16 %v692_v37, %v690_v36  ;;  %v1596_v9 = vpack.c.bf16 %v717_v7, %v715_v6  ;;  %v540_v37 = vld [vmem:[%s2471_s27 + $0x20] sm:$0xff]  ;;  %s1156_s27 = scalar_lea.sflag [#allocation4], %s2467_s15 }
 0x133   : > { %v1014_v7 = vld [vmem:[%s2496_s8 + $0x40] sm:$0xff]  ;;  %v1021_v10 = vld [vmem:[%s2496_s8 + $0x78] sm:$0xff] }
 0x134   : > { %882 = vmatmul.mubr.f32.vlgmr.msra.gmra.mrb[0].mxu0 %v538_v50  ;;  %1479 = vmatpush1.bf16.msra.mxu1 %v1478_v17  ;;  %v698_v50 = vld [vmem:[%s2479_s24 + $0x4e0] sm:$0xff]  ;;  %v720_v17 = vld [vmem:[%s2479_s24 + $0x590] sm:$0xff] }
 0x135   : > { %1555 = vmatpush1.bf16.msra.mxu0 %v1554_v51  ;;  %952 = vmatprep.mubr.f32.mxu0 %v541_v57  ;;  %v700_v51 = vld [vmem:[%s2479_s24 + $0x4f0] sm:$0xff]  ;;  %v1602_v20 = vpack.c.bf16 %v720_v17, %v718_v16  ;;  %v1025_v16 = vld [vmem:[%s2496_s8 + $0x98] sm:$0xff] }
 0x136   : > { %1557 = vmatprep.subr.bf16.mxu0 %v1556_v53  ;;  %1481 = vmatprep.subr.bf16.mxu1 %v1480_v19  ;;  %v705_v53 = vld [vmem:[%s2479_s24 + $0x518] sm:$0xff]  ;;  %v1582_v54 = vpack.c.bf16 %v700_v51, %v698_v50  ;;  %v704_v57 = vld [vmem:[%s2479_s24 + $0x510] sm:$0xff]  ;;  %v1029_v22 = vld [vmem:[%s2496_s8 + $0xb8] sm:$0xff] }
 0x137   : > { %v1584_v55 = vpack.c.bf16 %v705_v53, %v703_v52  ;;  %v1586_v60 = vpack.c.bf16 %v704_v57, %v702_v56  ;;  %v725_v19 = vld [vmem:[%s2479_s24 + $0x5b8] sm:$0xff]  ;;  %v1009_v57 = vld [vmem:[%s2496_s8 + $0x18] sm:$0xff] }
 0x138   : > { %1483 = vmatpush1.bf16.msra.mxu1 %v1482_v29  ;;  %v1604_v21 = vpack.c.bf16 %v725_v19, %v723_v18  ;;  %v728_v29 = vld [vmem:[%s2479_s24 + $0x5d0] sm:$0xff] }
 0x139   : > { %1559 = vmatpush1.bf16.msra.mxu0 %v1558_v0  ;;  %1485 = vmatprep.subr.bf16.mxu1 %v1484_v31  ;;  %v711_v0 = vld [vmem:[%s2479_s24 + $0x548] sm:$0xff]  ;;  %v733_v31 = vld [vmem:[%s2479_s24 + $0x5f8] sm:$0xff]  ;;  %v1610_v32 = vpack.c.bf16 %v728_v29, %v726_v28 }
 0x13a   : > { %1561 = vmatprep.subr.bf16.mxu0 %v1560_v1  ;;  %v713_v1 = vld [vmem:[%s2479_s24 + $0x558] sm:$0xff]  ;;  %v1612_v33 = vpack.c.bf16 %v733_v31, %v731_v30  ;;  %v1022_v19 = vld [vmem:[%s2496_s8 + $0x80] sm:$0xff]  ;;  %v1033_v28 = vld [vmem:[%s2496_s8 + $0xd8] sm:$0xff] }
 0x13b   : > { %v1592_v3 = vpack.c.bf16 %v713_v1, %v711_v0  ;;  %v1007_v56 = vld [vmem:[%s2496_s8 + $0x8] sm:$0xff]  ;;  %v1010_v1 = vld [vmem:[%s2496_s8 + $0x20] sm:$0xff] }
 0x13c   : > { %1487 = vmatpush1.bf16.msra.mxu1 %v1486_v38  ;;  %v1616_v59 = vpack.c.bf16 %v1009_v57, %v1007_v56  ;;  %v1030_v31 = vld [vmem:[%s2496_s8 + $0xc0] sm:$0xff]  ;;  %v1044_v56 = vld [vmem:[%s2496_s8 + $0x130] sm:$0xff]  ;;  %v1047_v57 = vld [vmem:[%s2496_s8 + $0x148] sm:$0xff] }
 0x13d   : > { %1563 = vmatpush1.bf16.msra.mxu0 %v1562_v12  ;;  %v719_v12 = vld [vmem:[%s2479_s24 + $0x588] sm:$0xff] }
 0x13e   : > { %1565 = vmatprep.subr.bf16.mxu0 %v1564_v13  ;;  %v721_v13 = vld [vmem:[%s2479_s24 + $0x598] sm:$0xff]  ;;  %1617 = vmatprep.subr.bf16.mxu1 %v1616_v59 }
 0x13f   : > { %811 = vmatmul.mubr.f32.vlgmr.msra.gmra.mrb[0].mxu1 %v536_v45  ;;  %v1600_v15 = vpack.c.bf16 %v721_v13, %v719_v12  ;;  %v1018_v13 = vld [vmem:[%s2496_s8 + $0x60] sm:$0xff] }
 0x141   : > { %1567 = vmatpush1.bf16.msra.mxu0 %v1566_v24  ;;  %v727_v24 = vld [vmem:[%s2479_s24 + $0x5c8] sm:$0xff] }
 0x142   : > { %1569 = vmatprep.subr.bf16.mxu0 %v1568_v25  ;;  %v729_v25 = vld [vmem:[%s2479_s24 + $0x5d8] sm:$0xff] }
 0x143   : > { %v1608_v27 = vpack.c.bf16 %v729_v25, %v727_v24  ;;  %v1026_v25 = vld [vmem:[%s2496_s8 + $0xa0] sm:$0xff] }
 0x145   : > { %1571 = vmatpush1.bf16.msra.mxu0 %v1570_v34  ;;  %v730_v34 = vld [vmem:[%s2479_s24 + $0x5e0] sm:$0xff] }
 0x146   : > { %1573 = vmatprep.subr.bf16.mxu0 %v1572_v35  ;;  %v732_v35 = vld [vmem:[%s2479_s24 + $0x5f0] sm:$0xff]  ;;  %s2004_s24 = scalar_lea.vmem %s2003_s21, 512 }
 0x147   : > { %v1614_v36 = vpack.c.bf16 %v732_v35, %v730_v34  ;;  %v1037_v34 = vld [vmem:[%s2496_s8 + $0xf8] sm:$0xff]  ;;  %p2006_p10 = scmp.lt.s32.totalorder %s2004_s24, %s1998_s18 }
 0x149   : > { %1575 = vmatpush1.bf16.msra.mxu0 %v1574_v41  ;;  %v737_v41 = vshrl.u32 %v736_v40, 7  ;;  %v1041_v40 = vld [vmem:[%s2496_s8 + $0x118] sm:$0xff]  ;;  %p2007_p7 = por %p2006_p10, %p2005_p11 }
 0x14a   : > { %1577 = vmatprep.subr.bf16.mxu0 %v1576_v42 }
 0x14b   : > { %v2700_v42 = vsub.s32 0, %v737_v41  ;;  %v2704_v44 = vsub.s32 1, %v737_v41  ;;  %p2008_p1 = pnand %p2007_p7, %p2001_p13 }
 0x14d   : > { %1579 = vmatpush1.bf16.msra.mxu0 %v1578_v48  ;;  %v739_v45 = vrot.slane %v734_v43, %v2700_v42  ;;  %v743_v46 = vrot.slane %v734_v43, %v2704_v44 }
 0x14e   : > { %1581 = vmatprep.subr.bf16.mxu0 %v1580_v49 }
 0x151   : > { %1583 = vmatpush1.bf16.msra.mxu0 %v1582_v54 }
 0x152   : > { %1585 = vmatprep.subr.bf16.mxu0 %v1584_v55 }
 0x155   : > { %1587 = vmatpush1.bf16.msra.mxu0 %v1586_v60  ;;  %v1008_v60 = vld [vmem:[%s2496_s8 + $0x10] sm:$0xff] }
 0x156   : > { %1589 = vmatprep.subr.bf16.mxu0 %v1588_v61  ;;  %v1011_v61 = vld [vmem:[%s2496_s8 + $0x28] sm:$0xff]  ;;  %v1618_v63 = vpack.c.bf16 %v1008_v60, %v1006_v58  ;;  %v1049_v58 = vld [vmem:[%s2496_s8 + $0x158] sm:$0xff] }
 0x157   : > { %v1620_v0 = vpack.c.bf16 %v1013_v62, %v1011_v61  ;;  %v1656_v60 = vpack.c.bf16 %v1049_v58, %v1047_v57  ;;  %v1046_v61 = vld [vmem:[%s2496_s8 + $0x140] sm:$0xff]  ;;  %v1048_v62 = vld [vmem:[%s2496_s8 + $0x150] sm:$0xff] }
 0x158   : > { %1619 = vmatpush1.bf16.msra.mxu1 %v1618_v63  ;;  %v1658_v63 = vpack.c.bf16 %v1048_v62, %v1046_v61 }
 0x159   : > { %1591 = vmatpush1.bf16.msra.mxu0 %v1590_v2  ;;  %v1012_v2 = vld [vmem:[%s2496_s8 + $0x30] sm:$0xff]  ;;  %1621 = vmatprep.subr.bf16.mxu1 %v1620_v0 }
 0x15a   : > { %1593 = vmatprep.subr.bf16.mxu0 %v1592_v3  ;;  %v1015_v3 = vld [vmem:[%s2496_s8 + $0x48] sm:$0xff]  ;;  %v1622_v5 = vpack.c.bf16 %v1012_v2, %v1010_v1 }
 0x15b   : > { %v1624_v6 = vpack.c.bf16 %v1017_v4, %v1015_v3 }
 0x15c   : > { %1623 = vmatpush1.bf16.msra.mxu1 %v1622_v5 }
 0x15d   : > { %1595 = vmatpush1.bf16.msra.mxu0 %v1594_v8  ;;  %v1016_v8 = vld [vmem:[%s2496_s8 + $0x50] sm:$0xff]  ;;  %1625 = vmatprep.subr.bf16.mxu1 %v1624_v6 }
 0x15e   : > { %1597 = vmatprep.subr.bf16.mxu0 %v1596_v9  ;;  %v1019_v9 = vld [vmem:[%s2496_s8 + $0x68] sm:$0xff]  ;;  %v1626_v11 = vpack.c.bf16 %v1016_v8, %v1014_v7  ;;  %v1053_v8 = vld [vmem:[%s2496_s8 + $0x178] sm:$0xff] }
 0x15f   : > { %v1628_v12 = vpack.c.bf16 %v1021_v10, %v1019_v9  ;;  %v1051_v7 = vld [vmem:[%s2496_s8 + $0x168] sm:$0xff]  ;;  %v1050_v10 = vld [vmem:[%s2496_s8 + $0x160] sm:$0xff] }
 0x160   : > { %1627 = vmatpush1.bf16.msra.mxu1 %v1626_v11  ;;  %v1660_v9 = vpack.c.bf16 %v1053_v8, %v1051_v7 }
 0x161   : > { %1599 = vmatpush1.bf16.msra.mxu0 %v1598_v14  ;;  %v1020_v14 = vld [vmem:[%s2496_s8 + $0x70] sm:$0xff]  ;;  %1629 = vmatprep.subr.bf16.mxu1 %v1628_v12  ;;  %v1054_v12 = vld [vmem:[%s2496_s8 + $0x180] sm:$0xff] }
 0x162   : > { %1601 = vmatprep.subr.bf16.mxu0 %v1600_v15  ;;  %v1023_v15 = vld [vmem:[%s2496_s8 + $0x88] sm:$0xff]  ;;  %v1630_v17 = vpack.c.bf16 %v1020_v14, %v1018_v13  ;;  %v1056_v13 = vld [vmem:[%s2496_s8 + $0x190] sm:$0xff] }
 0x163   : > { %v1632_v18 = vpack.c.bf16 %v1025_v16, %v1023_v15  ;;  %v1059_v14 = vld [vmem:[%s2496_s8 + $0x1a8] sm:$0xff]  ;;  %v1666_v15 = vpack.c.bf16 %v1056_v13, %v1054_v12  ;;  %v1061_v16 = vld [vmem:[%s2496_s8 + $0x1b8] sm:$0xff] }
 0x164   : > { %1631 = vmatpush1.bf16.msra.mxu1 %v1630_v17  ;;  %v1058_v17 = vld [vmem:[%s2496_s8 + $0x1a0] sm:$0xff] }
 0x165   : > { %1603 = vmatpush1.bf16.msra.mxu0 %v1602_v20  ;;  %v1024_v20 = vld [vmem:[%s2496_s8 + $0x90] sm:$0xff]  ;;  %1633 = vmatprep.subr.bf16.mxu1 %v1632_v18 }
 0x166   : > { %1605 = vmatprep.subr.bf16.mxu0 %v1604_v21  ;;  %v1027_v21 = vld [vmem:[%s2496_s8 + $0xa8] sm:$0xff]  ;;  %v1634_v23 = vpack.c.bf16 %v1024_v20, %v1022_v19  ;;  %v1060_v18 = vld [vmem:[%s2496_s8 + $0x1b0] sm:$0xff]  ;;  %v1668_v19 = vpack.c.bf16 %v1061_v16, %v1059_v14 }
 0x167   : > { %v1636_v24 = vpack.c.bf16 %v1029_v22, %v1027_v21  ;;  %v1063_v20 = vld [vmem:[%s2496_s8 + $0x1c8] sm:$0xff]  ;;  %v1065_v21 = vld [vmem:[%s2496_s8 + $0x1d8] sm:$0xff]  ;;  %v1670_v22 = vpack.c.bf16 %v1060_v18, %v1058_v17 }
 0x168   : > { %1635 = vmatpush1.bf16.msra.mxu1 %v1634_v23  ;;  %v1672_v23 = vpack.c.bf16 %v1065_v21, %v1063_v20 }
 0x169   : > { %1607 = vmatpush1.bf16.msra.mxu0 %v1606_v26  ;;  %v1028_v26 = vld [vmem:[%s2496_s8 + $0xb0] sm:$0xff]  ;;  %1637 = vmatprep.subr.bf16.mxu1 %v1636_v24  ;;  %v1062_v24 = vld [vmem:[%s2496_s8 + $0x1c0] sm:$0xff] }
 0x16a   : > { %1609 = vmatprep.subr.bf16.mxu0 %v1608_v27  ;;  %v1031_v27 = vld [vmem:[%s2496_s8 + $0xc8] sm:$0xff]  ;;  %v1638_v29 = vpack.c.bf16 %v1028_v26, %v1026_v25  ;;  %v1064_v25 = vld [vmem:[%s2496_s8 + $0x1d0] sm:$0xff] }
 0x16b   : > { %v1640_v30 = vpack.c.bf16 %v1033_v28, %v1031_v27  ;;  %v1067_v26 = vld [vmem:[%s2496_s8 + $0x1e8] sm:$0xff]  ;;  %v1069_v27 = vld [vmem:[%s2496_s8 + $0x1f8] sm:$0xff]  ;;  %v1674_v28 = vpack.c.bf16 %v1064_v25, %v1062_v24 }
 0x16c   : > { %1639 = vmatpush1.bf16.msra.mxu1 %v1638_v29  ;;  %v1676_v29 = vpack.c.bf16 %v1069_v27, %v1067_v26 }
 0x16d   : > { %1611 = vmatpush1.bf16.msra.mxu0 %v1610_v32  ;;  %v1032_v32 = vld [vmem:[%s2496_s8 + $0xd0] sm:$0xff]  ;;  %1641 = vmatprep.subr.bf16.mxu1 %v1640_v30  ;;  %v1066_v30 = vld [vmem:[%s2496_s8 + $0x1e0] sm:$0xff] }
 0x16e   : > { %1613 = vmatprep.subr.bf16.mxu0 %v1612_v33  ;;  %v1035_v33 = vld [vmem:[%s2496_s8 + $0xe8] sm:$0xff]  ;;  %v1642_v35 = vpack.c.bf16 %v1032_v32, %v1030_v31  ;;  %v1068_v31 = vld [vmem:[%s2496_s8 + $0x1f0] sm:$0xff] }
 0x16f   : > { %v1678_v32 = vpack.c.bf16 %v1068_v31, %v1066_v30 }
 0x170   : > { %1643 = vmatpush1.bf16.msra.mxu1 %v1642_v35 }
 0x171   : > { %1615 = vmatpush1.bf16.msra.mxu0 %v1614_v36  ;;  %v1644_v36 = vpack.c.bf16 %v1037_v34, %v1035_v33 }
 0x173   : > { %1645 = vmatprep.subr.bf16.mxu1 %v1644_v36  ;;  %v961_v36 = vld [vmem:[%s448_s12] sm:$0x3] }
 0x174   : > { %953 = vmatmul.mubr.f32.vlgmr.msra.gmra.mrb[0].mxu0 %v540_v37  ;;  %v1034_v37 = vld [vmem:[%s2496_s8 + $0xe0] sm:$0xff] }
 0x212   : > { %v812_v38 = vpop.f32.mrb[0].mxu1 }
 0x213   : > { %v814_v39 = vpop.f32.mrb[1].mxu1  ;;  %v813_v47 = vadd.f32 %v812_v38, %v739_v45  ;;  %v1036_v38 = vld [vmem:[%s2496_s8 + $0xf0] sm:$0xff]  ;;  %v1038_v45 = vld [vmem:[%s2496_s8 + $0x100] sm:$0xff] }
 0x214   : > { %v815_v48 = vadd.f32 %v814_v39, %v743_v46  ;;  %v1039_v39 = vld [vmem:[%s2496_s8 + $0x108] sm:$0xff]  ;;  %v1646_v41 = vpack.c.bf16 %v1036_v38, %v1034_v37  ;;  %v1040_v46 = vld [vmem:[%s2496_s8 + $0x110] sm:$0xff]  ;;  %v962_v37 = vld [vmem:[%s457_s22] sm:$0x3]  ;;  %v984_v38 = vrot.slane %v961_v36, %v2700_v42 }
 0x215   : > { %v1648_v43 = vpack.c.bf16 %v1041_v40, %v1039_v39  ;;  %v988_v39 = vrot.slane %v961_v36, %v2704_v44 }
 0x216   : > { %1647 = vmatpush1.bf16.msra.mxu1 %v1646_v41 }
 0x217   : > { %1649 = vmatprep.subr.bf16.mxu1 %v1648_v43  ;;  %v997_v43 = vrot.slane %v962_v37, %v2700_v42 }
 0x247   : > { %v954_v49 = vpop.f32.mrb[0].mxu0 }
 0x248   : > { %v2708_v50 = vadd.f32 %v954_v49, %v813_v47  ;;  %v956_v51 = vpop.f32.mrb[1].mxu0  ;;  %v1043_v47 = vld [vmem:[%s2496_s8 + $0x128] sm:$0xff]  ;;  %v1650_v49 = vpack.c.bf16 %v1040_v46, %v1038_v45  ;;  %v1001_v45 = vrot.slane %v962_v37, %v2704_v44 }
 0x249   : > { %v2710_v52 = vadd.f32 %v956_v51, %v815_v48  ;;  %v1045_v48 = vld [vmem:[%s2496_s8 + $0x138] sm:$0xff] }
 0x24a   : > { %v959_v53 = vmax.f32 %v2708_v50, 0.0  ;;  %v1652_v51 = vpack.c.bf16 %v1045_v48, %v1043_v47  ;;  %1651 = vmatpush1.bf16.msra.mxu1 %v1650_v49  ;;  %v1052_v50 = vld [vmem:[%s2496_s8 + $0x170] sm:$0xff] }
 0x24b   : > { %v960_v54 = vmax.f32 %v2710_v52, 0.0  ;;  %v1055_v52 = vld [vmem:[%s2496_s8 + $0x188] sm:$0xff] }
 0x24c   : > { %1653 = vmatprep.subr.bf16.mxu1 %v1652_v51 }
 0x24d   : > { %v963_v55 = vadd.f32 %v960_v54, %v959_v53 }
 0x24f   : > { %964 = vadd.xlane.f32.xlu0 %v963_v55  ;;  %v1042_v55 = vld [vmem:[%s2496_s8 + $0x120] sm:$0xff] }
 0x250   : > { %v1654_v59 = vpack.c.bf16 %v1044_v56, %v1042_v55  ;;  %v1070_v55 = vld [vmem:[%s475_s26] sm:$0x3] }
 0x251   : > { %v1075_v56 = vrot.slane %v1070_v55, %v2700_v42  ;;  %v1079_v57 = vrot.slane %v1070_v55, %v2704_v44 }
 0x252   : > { %1655 = vmatpush1.bf16.msra.mxu1 %v1654_v59 }
 0x253   : > { %1657 = vmatprep.subr.bf16.mxu1 %v1656_v60 }
 0x256   : > { %1659 = vmatpush1.bf16.msra.mxu1 %v1658_v63 }
 0x257   : > { %1661 = vmatprep.subr.bf16.mxu1 %v1660_v9 }
 0x2dc   : > { %v965_v0 = vpop.xlane.xlu0 %964 }
 0x2dd   : > { %v967_v1 = vmul.f32 0.00390625, %v965_v0 }
 0x2df   : > { %v968_v2 = vsub.f32 %v959_v53, %v967_v1  ;;  %v969_v3 = vsub.f32 %v960_v54, %v967_v1  ;;  %v1662_v53 = vpack.c.bf16 %v1052_v50, %v1050_v10  ;;  %v1057_v54 = vld [vmem:[%s2496_s8 + $0x198] sm:$0xff] }
 0x2e0   : > { %v1664_v11 = vpack.c.bf16 %v1057_v54, %v1055_v52 }
 0x2e1   : > { %v970_v4 = vmul.f32 %v968_v2, %v968_v2  ;;  %v971_v5 = vmul.f32 %v969_v3, %v969_v3  ;;  %1663 = vmatpush1.bf16.msra.mxu1 %v1662_v53 }
 0x2e2   : > { %1665 = vmatprep.subr.bf16.mxu1 %v1664_v11 }
 0x2e3   : > { %v972_v6 = vadd.f32 %v971_v5, %v970_v4 }
 0x2e5   : > { %973 = vadd.xlane.f32.xlu0 %v972_v6  ;;  %1667 = vmatpush1.bf16.msra.mxu1 %v1666_v15 }
 0x2e6   : > { %1669 = vmatprep.subr.bf16.mxu1 %v1668_v19 }
 0x2e9   : > { %1671 = vmatpush1.bf16.msra.mxu1 %v1670_v22 }
 0x2ea   : > { %1673 = vmatprep.subr.bf16.mxu1 %v1672_v23 }
 0x2ed   : > { %1675 = vmatpush1.bf16.msra.mxu1 %v1674_v28 }
 0x2ee   : > { %1677 = vmatprep.subr.bf16.mxu1 %v1676_v29 }
 0x2f1   : > { %1679 = vmatpush1.bf16.msra.mxu1 %v1678_v32 }
 0x372   : > { %v974_v33 = vpop.xlane.xlu0 %973 }
 0x373   : > { %v975_v34 = vmul.f32 0.00390625, %v974_v33 }
 0x375   : > { %v976_v35 = vadd.f32 1e-05, %v975_v34 }
 0x377   : > { %1786 = vrsqrt.f32 %v976_v35 }
 0x381   : > { %v1787_v40 = vpop.eup %1786 }
 0x382   : > { %v979_v41 = vmul.f32 %v1787_v40, %v969_v3  ;;  %v978_v46 = vmul.f32 %v1787_v40, %v968_v2 }
 0x384   : > { %v992_v47 = vmul.f32 %v988_v39, %v979_v41  ;;  %v991_v48 = vmul.f32 %v984_v38, %v978_v46 }
 0x386   : > { %v1005_v49 = vadd.f32 %v1001_v45, %v992_v47  ;;  %v1004_v51 = vadd.f32 %v997_v43, %v991_v48 }
 0x388   : > { %1146 = vmatprep.mubr.f32.mxu1 %v1005_v49 }
 0x389   : > { %1147 = vmatmul.mubr.f32.vlgmr.msra.gmra.mrb[2].mxu1 %v1004_v51 }
 0x45c   : > { %v1148_v58 = vpop.f32.mrb[2].mxu1 }
 0x45d   : > { %v1149_v59 = vadd.f32 %v1148_v58, %v1075_v56  ;;  %v1150_v60 = vpop.f32.mrb[3].mxu1 }
 0x45e   : > { %v1151_v61 = vadd.f32 %v1150_v60, %v1079_v57 }
 0x45f   : > { %1153 = vst [vmem:[%s535_s10] sm:$0xff] %v1149_v59 }
 0x460   : > { %1154 = vst [vmem:[%s535_s10 + $0x8] sm:$0xff] %v1151_v61 }
 0x461   : > { %2011 = shalt.err (!%p2008_p1)
}
 0x462   : > { %s2012_s15 = scalar_lea.hbm %s2802_s11, 256  ;;  %s2016_s1 = scalar_lea.hbm %s2908_s19, 512 }
 0x463   : > { %p2013_p3 = scmp.ne.s32.totalorder %s2802_s11, %s2012_s15  ;;  %p2017_p12 = scmp.lt.u32.totalorder %s2802_s11, %s2908_s19 }
 0x464   : > { %p2018_p6 = scmp.lt.u32.totalorder %s2016_s1, %s2012_s15  ;;  %p2020_p5 = scmp.lt.u32.totalorder %s2012_s15, %s2802_s11 }
 0x465   : > { %p2014_p0 = pnand %p2013_p3, %p2909_p8 }
 0x466   : > { %p2019_p2 = por %p2018_p6, %p2017_p12 }
 0x467   : > { %p2015_p9 = pneg %p2014_p0 }
 0x468   : > { %p2021_p4 = por %p2020_p5, %p2019_p2 }
 0x46a   : > { %p2022_p13 = pnand %p2021_p4, %p2015_p9 }
 0x46c   : > { %2025 = shalt.err (!%p2022_p13)
}
 0x46d   : > { %1706 = dma.vmem_to_hbm [thread:$0]  (%p2909_p8), %s2804_s23, 256, %s2802_s11, %s1156_s27  }
 0x46e PF: > { %s2910_s22 = sld [smem:[#allocation20_spill]]  ;;  %s2911_s5 = sld [smem:[#allocation27_spill]] }
 0x46f   : > { %s2912_s8 = sld [smem:[#allocation23_spill]] }
 0x474   : > { %s1184_s13 = sand.u32 1, %s2910_s22   ;;  %p2913_p11 = scmp.ne.s32.totalorder %s2911_s5, 0 }
 0x475   : > { %p2914_p10 = scmp.ge.s32.totalorder %s2912_s8, 2  ;;  %s1185_s9 = scalar_lea.sflag [#allocation4], %s1184_s13 }
 0x477   : > { %p1731_p7 = pnand %p2914_p10, %p2913_p11 }
 0x479   : > { %2067 = dma.done.wait (!%p1731_p7), %s1185_s9, 256  }
 0x47a   : > { %2069 = vsyncadd (!%p1731_p7), %s1185_s9, 4294967040  ;;  %s32_s29 = sadd.s32 1, %s2912_s8   ;;  %s2915_s26 = sld [smem:[#allocation21_spill]] }
 0x47b   : > { %p29_p1 = scmp.ge.s32.totalorder %s32_s29, 4   ;;  %s2916_s14 = sld [smem:[#allocation26_spill]] }
 0x47c   : > { %s2917_s10 = sld [smem:[#allocation24_spill]]  ;;  %s2918_s24 = smov %s2076_s25 }
 0x47d   : > { %s2921_s27 = smov %s2088_s28  ;;  %31 = sbr.rel (!%p29_p1) target bundleno = 17 (0x11), region = 165 }
 0x480   : > { %s2919_s25 = smov %s2915_s26 }
 0x481   : > { %s2920_s26 = smov %s2916_s14 }
 0x482   : > { %s2922_s28 = smov %s2917_s10 }
 0x484   :  { %1190 = vsyncpa [#allocation3], 1 }
 0x485   :  { %1192 = vsyncpa [#allocation3 + $0x1], 1 }
 0x486   :  { %1193 = vsyncpa [#allocation6], 1 }
 0x487   :  { %1195 = vsyncpa [#allocation6 + $0x1], 1 }
 0x488   :  { %1196 = vsyncpa [#allocation9], 1 }
 0x489   :  { %1198 = vsyncpa [#allocation9 + $0x1], 1 }
 0x48a   :  { %1199 = vsyncpa [#allocation12], 1 }
 0x48b   :  { %1201 = vsyncpa [#allocation12 + $0x1], 1 }
 0x48c   :  { %1202 = vsyncpa [#allocation4], 1 }
 0x48d   :  { %1204 = vsyncpa [#allocation4 + $0x1], 1 }

</bundles_post_ra>
